<compile_context>
chip_gen: v5e
topology: v5e:2x2
jax: 0.10.0
libtpu: 0.0.40
codegen_flags: <defaults>
</compile_context>

<pallas_src>
import jax
import jax.numpy as jnp
from jax.experimental import pallas as pl
from jax.experimental.pallas import tpu as pltpu

NUM_SQUARING_GROUPS = 5   # 5 groups of 3 squarings -> B^(2^15), effective ~32768 power steps
SQUARINGS_PER_GROUP = 3   # f32-safe without intermediate renorm for D = 128 (|entries| <= 2^49)
NUM_REFINE = 2            # cheap clean-up matvecs with the un-squared shifted matrix


# ---------------------------------------------------------------------------
# Fused kernel: energy + Hessian + bottom eigenvector + sample update
# ---------------------------------------------------------------------------
def fused_hessian_bottomk_kernel(w_ref, x_ref, y_ref, t_ref, o_ref, e_ref):
    W = w_ref[...]                       # (M, D) f32
    x = x_ref[...]                       # (1, D) f32
    y = y_ref[...]                       # (1, M) f32
    t = t_ref[0]                         # scalar, read from SMEM
    D = W.shape[1]

    # ---- energy: E = 0.5*||x W^T - y||^2 + 0.5*||x||^2  (computed as in the module,
    #      but -- like the module -- not used by the update itself)
    r = jax.lax.dot_general(x, W, (((1,), (1,)), ((), ())),
                            preferred_element_type=jnp.float32) - y      # (1, M)
    energy = 0.5 * jnp.sum(r * r) + 0.5 * jnp.sum(x * x)
    e_ref[...] = jnp.reshape(energy, (1, 1))

    # ---- Hessian H = W^T W + I  (kept on-chip; never written to HBM)
    gram = jax.lax.dot_general(W, W, (((0,), (0,)), ((), ())),
                               preferred_element_type=jnp.float32)       # (D, D)
    row = jax.lax.broadcasted_iota(jnp.int32, (D, D), 0)
    col = jax.lax.broadcasted_iota(jnp.int32, (D, D), 1)
    eye = jnp.where(row == col, 1.0, 0.0).astype(jnp.float32)
    H = gram + eye

    # ---- shifted matrix B = sigma*I - H (PSD); its top eigvec == bottom eigvec of H
    gersh = jnp.max(jnp.sum(jnp.abs(H), axis=-1, keepdims=True))   # Gershgorin bound on lambda_max
    frob = jnp.sqrt(jnp.sum(H * H))                                # Frobenius bound on lambda_max
    sigma = jnp.minimum(gersh, frob)
    B = sigma * eye - H

    # ---- repeated squaring on the MXU; renormalize only once per group of 3 squarings
    #      (scale is irrelevant to the eigenvector -- renorm only guards f32 range).
    scale0 = jnp.maximum(jnp.max(jnp.abs(B)), 1e-30)
    Bp = B * (1.0 / scale0)
    for _ in range(NUM_SQUARING_GROUPS):         # statically unrolled: 15 dense 128^3 matmuls
        for _ in range(SQUARINGS_PER_GROUP):     # back-to-back MXU squarings, no reductions
            Bp = jnp.dot(Bp, Bp, preferred_element_type=jnp.float32)
        m = jnp.maximum(jnp.max(jnp.abs(Bp)), 1e-30)
        Bp = Bp * (1.0 / m)

    # ---- dominant eigenvector of B = bottom eigenvector of H
    lane = jax.lax.broadcasted_iota(jnp.int32, (1, D), 1).astype(jnp.float32)
    v0 = 1.0 + 1e-3 * lane               # deterministic, not axis-aligned start
    v = jnp.dot(v0, Bp, preferred_element_type=jnp.float32)              # (1, D)
    for _ in range(NUM_REFINE):          # cheap refinement with the un-squared B (symmetric)
        v = v * jax.lax.rsqrt(jnp.sum(v * v) + 1e-30)
        v = jnp.dot(v, B, preferred_element_type=jnp.float32)
    v = v * jax.lax.rsqrt(jnp.sum(v * v) + 1e-30)

    # ---- num_components = 1; stepSize hard-coded to 1.0 in the reference module
    o_ref[...] = x + t * v


def hessian_bottomk_step(W, x_row, y_row, t_val):
    """One fused sampler step. Returns (new_draw (1,D), energy (1,1))."""
    M, D = W.shape
    return pl.pallas_call(
        fused_hessian_bottomk_kernel,
        out_shape=(jax.ShapeDtypeStruct((1, D), jnp.float32),
                   jax.ShapeDtypeStruct((1, 1), jnp.float32)),
        in_specs=[pl.BlockSpec(memory_space=pltpu.MemorySpace.VMEM),   # W
                  pl.BlockSpec(memory_space=pltpu.MemorySpace.VMEM),   # x
                  pl.BlockSpec(memory_space=pltpu.MemorySpace.VMEM),   # y
                  pl.BlockSpec(memory_space=pltpu.MemorySpace.SMEM)],  # t (scalar)
        out_specs=(pl.BlockSpec(memory_space=pltpu.MemorySpace.VMEM),  # new_draw
                   pl.BlockSpec(memory_space=pltpu.MemorySpace.VMEM)), # energy
    )(W, x_row, y_row, t_val)


# ---------------------------------------------------------------------------
# Module wrapper mirroring Hessian.forward
# ---------------------------------------------------------------------------
class HessianPallas:
    def __init__(self, numSteps, stepSize, **kwargs):
        self.numSteps = numSteps
        self.stepSize = stepSize
        self.kwargs = kwargs
        self.t = -1.0

    def forward(self, previousSample, energy_function=None, numSteps=1, stepSize=0.01,
                k=5, **kwargs):
        # energy_function is fused into the single Pallas kernel below (quadratic energy
        # defined by the decoder (W, y)); its value is computed but, as in the original
        # module, not used by the update.
        W, y = kwargs['decoder']
        x_row = previousSample.reshape(1, -1).astype(jnp.float32)
        y_row = y.reshape(1, -1).astype(jnp.float32)

        self.t += 0.1   # (original module prints self.t here)
        t_arr = jnp.full((1,), self.t, dtype=jnp.float32)

        # for _ in range(1): single update step, stepSize hard-coded to 1.0,
        # num_components = 1, beta is drawn but unused by the update.
        new_draw, _energy = hessian_bottomk_step(W.astype(jnp.float32), x_row, y_row, t_arr)
        return new_draw.reshape(previousSample.shape)


if __name__ == "__main__":
    D, M = 128, 256   # latent dim, decoder output dim

    key = jax.random.PRNGKey(0)
    k_w, k_y, k_x = jax.random.split(key, 3)
    W = (0.1 * jax.random.normal(k_w, (M, D))).astype(jnp.float32)   # decoder weight
    y = jax.random.normal(k_y, (M,)).astype(jnp.float32)             # decoder target
    x = jax.random.normal(k_x, (D,)).astype(jnp.float32)             # previousSample

    sampler = HessianPallas(numSteps=1, stepSize=0.01)
    out = sampler.forward(x, None, numSteps=1, stepSize=0.01, k=5, decoder=(W, y))
    out = jax.block_until_ready(out)

    assert out.shape == x.shape and out.dtype == jnp.float32
    assert bool(jnp.all(jnp.isfinite(out)))

    # Reference check against eigh (sign ambiguity handled by taking the better of +/- v).
    H_ref = W.T @ W + jnp.eye(D, dtype=jnp.float32)
    _, evecs = jnp.linalg.eigh(H_ref)
    v_ref = evecs[:, 0]
    ref_p = x + sampler.t * v_ref
    ref_m = x - sampler.t * v_ref
    err = jnp.minimum(jnp.max(jnp.abs(out - ref_p)), jnp.max(jnp.abs(out - ref_m)))
    assert float(err) < 5e-3, f"mismatch vs eigh reference: {float(err)}"

    print("KERNEL_OK")
</pallas_src>

<mosaic_0001>
module attributes {stable_mosaic.version = 11 : i64} {
  func.func @fused_hessian_bottomk_kernel(%arg0: memref<256x128xf32, #tpu.memory_space<vmem>>, %arg1: memref<1x128xf32, #tpu.memory_space<vmem>>, %arg2: memref<1x256xf32, #tpu.memory_space<vmem>>, %arg3: memref<1xf32, #tpu.memory_space<smem>>, %arg4: memref<1x128xf32, #tpu.memory_space<vmem>>, %arg5: memref<1x1xf32, #tpu.memory_space<vmem>>) attributes {dimension_semantics = [], scalar_prefetch = 0 : i64, scratch_operands = 0 : i64, tpu.core_type = #tpu.core_type<tc>} {
    %c0 = arith.constant 0 : index
    %c0_0 = arith.constant 0 : index
    %0 = vector.load %arg0[%c0, %c0_0] : memref<256x128xf32, #tpu.memory_space<vmem>>, vector<256x128xf32>
    %c0_1 = arith.constant 0 : index
    %c0_2 = arith.constant 0 : index
    %1 = vector.load %arg1[%c0_1, %c0_2] : memref<1x128xf32, #tpu.memory_space<vmem>>, vector<1x128xf32>
    %c0_3 = arith.constant 0 : index
    %c0_4 = arith.constant 0 : index
    %2 = vector.load %arg2[%c0_3, %c0_4] : memref<1x256xf32, #tpu.memory_space<vmem>>, vector<1x256xf32>
    %c0_5 = arith.constant 0 : index
    %3 = memref.load %arg3[%c0_5] : memref<1xf32, #tpu.memory_space<smem>>
    %cst = arith.constant dense<0.000000e+00> : vector<1x256xf32>
    %4 = tpu.matmul %1, %0, %cst {dimension_numbers = #tpu.dot_dimension_numbers<[1], [1], [0], [0], [0, 0, 1, 0], [], []>} : vector<1x128xf32>, vector<256x128xf32>, vector<1x256xf32> -> vector<1x256xf32>
    %5 = arith.subf %4, %2 : vector<1x256xf32>
    %6 = arith.mulf %5, %5 : vector<1x256xf32>
    %7 = vector.shape_cast %6 : vector<1x256xf32> to vector<1x1x256xf32>
    %cst_6 = arith.constant dense<0.000000e+00> : vector<1xf32>
    %8 = vector.multi_reduction <add>, %7, %cst_6 [1, 2] : vector<1x1x256xf32> to vector<1xf32>
    %9 = vector.shape_cast %8 : vector<1xf32> to vector<1x1x1xf32>
    %10 = vector.extract %9[0, 0, 0] : f32 from vector<1x1x1xf32>
    %cst_7 = arith.constant 5.000000e-01 : f32
    %11 = arith.mulf %cst_7, %10 : f32
    %12 = arith.mulf %1, %1 : vector<1x128xf32>
    %13 = vector.shape_cast %12 : vector<1x128xf32> to vector<1x1x128xf32>
    %cst_8 = arith.constant dense<0.000000e+00> : vector<1xf32>
    %14 = vector.multi_reduction <add>, %13, %cst_8 [1, 2] : vector<1x1x128xf32> to vector<1xf32>
    %15 = vector.shape_cast %14 : vector<1xf32> to vector<1x1x1xf32>
    %16 = vector.extract %15[0, 0, 0] : f32 from vector<1x1x1xf32>
    %cst_9 = arith.constant 5.000000e-01 : f32
    %17 = arith.mulf %cst_9, %16 : f32
    %18 = arith.addf %11, %17 : f32
    %19 = vector.broadcast %18 : f32 to vector<1x1xf32>
    %c0_10 = arith.constant 0 : index
    %c0_11 = arith.constant 0 : index
    %20 = vector.load %arg5[%c0_10, %c0_11] : memref<1x1xf32, #tpu.memory_space<vmem>>, vector<1x1xf32>
    tpu.vector_store %arg5[%c0_10, %c0_11], %19 {strides = array<i32>} : memref<1x1xf32, #tpu.memory_space<vmem>>, vector<1x1xf32>,
    %cst_12 = arith.constant dense<0.000000e+00> : vector<128x128xf32>
    %21 = tpu.matmul %0, %0, %cst_12 {dimension_numbers = #tpu.dot_dimension_numbers<[0], [0], [1], [1], [0, 1, 1, 1], [], []>} : vector<256x128xf32>, vector<256x128xf32>, vector<128x128xf32> -> vector<128x128xf32>
    %22 = tpu.iota {dimensions = array<i32: 0>} : vector<128x128xi32>
    %23 = tpu.iota {dimensions = array<i32: 1>} : vector<128x128xi32>
    %24 = arith.cmpi eq, %22, %23 : vector<128x128xi32>
    %cst_13 = arith.constant 1.000000e+00 : f32
    %cst_14 = arith.constant 0.000000e+00 : f32
    %25 = vector.broadcast %cst_13 : f32 to vector<128x128xf32>
    %26 = vector.broadcast %cst_14 : f32 to vector<128x128xf32>
    %27 = arith.select %24, %25, %26 : vector<128x128xi1>, vector<128x128xf32>
    %28 = arith.addf %21, %27 : vector<128x128xf32>
    %29 = math.absf %28 : vector<128x128xf32>
    %cst_15 = arith.constant dense<0.000000e+00> : vector<128xf32>
    %30 = vector.multi_reduction <add>, %29, %cst_15 [1] : vector<128x128xf32> to vector<128xf32>
    %31 = vector.shape_cast %30 : vector<128xf32> to vector<128x1xf32>
    %32 = vector.shape_cast %31 : vector<128x1xf32> to vector<1x128x1xf32>
    %cst_16 = arith.constant dense<0xFF800000> : vector<1xf32>
    %33 = vector.multi_reduction <maximumf>, %32, %cst_16 [1, 2] : vector<1x128x1xf32> to vector<1xf32>
    %34 = vector.shape_cast %33 : vector<1xf32> to vector<1x1x1xf32>
    %35 = vector.extract %34[0, 0, 0] : f32 from vector<1x1x1xf32>
    %36 = arith.mulf %28, %28 : vector<128x128xf32>
    %37 = vector.shape_cast %36 : vector<128x128xf32> to vector<1x128x128xf32>
    %cst_17 = arith.constant dense<0.000000e+00> : vector<1xf32>
    %38 = vector.multi_reduction <add>, %37, %cst_17 [1, 2] : vector<1x128x128xf32> to vector<1xf32>
    %39 = vector.shape_cast %38 : vector<1xf32> to vector<1x1x1xf32>
    %40 = vector.extract %39[0, 0, 0] : f32 from vector<1x1x1xf32>
    %41 = math.sqrt %40 : f32
    %42 = arith.minimumf %35, %41 : f32
    %43 = vector.broadcast %42 : f32 to vector<128x128xf32>
    %44 = arith.mulf %43, %27 : vector<128x128xf32>
    %45 = arith.subf %44, %28 : vector<128x128xf32>
    %46 = math.absf %45 : vector<128x128xf32>
    %47 = vector.shape_cast %46 : vector<128x128xf32> to vector<1x128x128xf32>
    %cst_18 = arith.constant dense<0xFF800000> : vector<1xf32>
    %48 = vector.multi_reduction <maximumf>, %47, %cst_18 [1, 2] : vector<1x128x128xf32> to vector<1xf32>
    %49 = vector.shape_cast %48 : vector<1xf32> to vector<1x1x1xf32>
    %50 = vector.extract %49[0, 0, 0] : f32 from vector<1x1x1xf32>
    %cst_19 = arith.constant 1.000000e-30 : f32
    %51 = arith.maximumf %50, %cst_19 : f32
    %cst_20 = arith.constant 1.000000e+00 : f32
    %52 = arith.divf %cst_20, %51 : f32
    %53 = vector.broadcast %52 : f32 to vector<128x128xf32>
    %54 = arith.mulf %45, %53 : vector<128x128xf32>
    %cst_21 = arith.constant dense<0.000000e+00> : vector<128x128xf32>
    %55 = tpu.matmul %54, %54, %cst_21 {dimension_numbers = #tpu.dot_dimension_numbers<[1], [0], [0], [1], [0, 0, 1, 1], [], []>} : vector<128x128xf32>, vector<128x128xf32>, vector<128x128xf32> -> vector<128x128xf32>
    %cst_22 = arith.constant dense<0.000000e+00> : vector<128x128xf32>
    %56 = tpu.matmul %55, %55, %cst_22 {dimension_numbers = #tpu.dot_dimension_numbers<[1], [0], [0], [1], [0, 0, 1, 1], [], []>} : vector<128x128xf32>, vector<128x128xf32>, vector<128x128xf32> -> vector<128x128xf32>
    %cst_23 = arith.constant dense<0.000000e+00> : vector<128x128xf32>
    %57 = tpu.matmul %56, %56, %cst_23 {dimension_numbers = #tpu.dot_dimension_numbers<[1], [0], [0], [1], [0, 0, 1, 1], [], []>} : vector<128x128xf32>, vector<128x128xf32>, vector<128x128xf32> -> vector<128x128xf32>
    %58 = math.absf %57 : vector<128x128xf32>
    %59 = vector.shape_cast %58 : vector<128x128xf32> to vector<1x128x128xf32>
    %cst_24 = arith.constant dense<0xFF800000> : vector<1xf32>
    %60 = vector.multi_reduction <maximumf>, %59, %cst_24 [1, 2] : vector<1x128x128xf32> to vector<1xf32>
    %61 = vector.shape_cast %60 : vector<1xf32> to vector<1x1x1xf32>
    %62 = vector.extract %61[0, 0, 0] : f32 from vector<1x1x1xf32>
    %cst_25 = arith.constant 1.000000e-30 : f32
    %63 = arith.maximumf %62, %cst_25 : f32
    %cst_26 = arith.constant 1.000000e+00 : f32
    %64 = arith.divf %cst_26, %63 : f32
    %65 = vector.broadcast %64 : f32 to vector<128x128xf32>
    %66 = arith.mulf %57, %65 : vector<128x128xf32>
    %cst_27 = arith.constant dense<0.000000e+00> : vector<128x128xf32>
    %67 = tpu.matmul %66, %66, %cst_27 {dimension_numbers = #tpu.dot_dimension_numbers<[1], [0], [0], [1], [0, 0, 1, 1], [], []>} : vector<128x128xf32>, vector<128x128xf32>, vector<128x128xf32> -> vector<128x128xf32>
    %cst_28 = arith.constant dense<0.000000e+00> : vector<128x128xf32>
    %68 = tpu.matmul %67, %67, %cst_28 {dimension_numbers = #tpu.dot_dimension_numbers<[1], [0], [0], [1], [0, 0, 1, 1], [], []>} : vector<128x128xf32>, vector<128x128xf32>, vector<128x128xf32> -> vector<128x128xf32>
    %cst_29 = arith.constant dense<0.000000e+00> : vector<128x128xf32>
    %69 = tpu.matmul %68, %68, %cst_29 {dimension_numbers = #tpu.dot_dimension_numbers<[1], [0], [0], [1], [0, 0, 1, 1], [], []>} : vector<128x128xf32>, vector<128x128xf32>, vector<128x128xf32> -> vector<128x128xf32>
    %70 = math.absf %69 : vector<128x128xf32>
    %71 = vector.shape_cast %70 : vector<128x128xf32> to vector<1x128x128xf32>
    %cst_30 = arith.constant dense<0xFF800000> : vector<1xf32>
    %72 = vector.multi_reduction <maximumf>, %71, %cst_30 [1, 2] : vector<1x128x128xf32> to vector<1xf32>
    %73 = vector.shape_cast %72 : vector<1xf32> to vector<1x1x1xf32>
    %74 = vector.extract %73[0, 0, 0] : f32 from vector<1x1x1xf32>
    %cst_31 = arith.constant 1.000000e-30 : f32
    %75 = arith.maximumf %74, %cst_31 : f32
    %cst_32 = arith.constant 1.000000e+00 : f32
    %76 = arith.divf %cst_32, %75 : f32
    %77 = vector.broadcast %76 : f32 to vector<128x128xf32>
    %78 = arith.mulf %69, %77 : vector<128x128xf32>
    %cst_33 = arith.constant dense<0.000000e+00> : vector<128x128xf32>
    %79 = tpu.matmul %78, %78, %cst_33 {dimension_numbers = #tpu.dot_dimension_numbers<[1], [0], [0], [1], [0, 0, 1, 1], [], []>} : vector<128x128xf32>, vector<128x128xf32>, vector<128x128xf32> -> vector<128x128xf32>
    %cst_34 = arith.constant dense<0.000000e+00> : vector<128x128xf32>
    %80 = tpu.matmul %79, %79, %cst_34 {dimension_numbers = #tpu.dot_dimension_numbers<[1], [0], [0], [1], [0, 0, 1, 1], [], []>} : vector<128x128xf32>, vector<128x128xf32>, vector<128x128xf32> -> vector<128x128xf32>
    %cst_35 = arith.constant dense<0.000000e+00> : vector<128x128xf32>
    %81 = tpu.matmul %80, %80, %cst_35 {dimension_numbers = #tpu.dot_dimension_numbers<[1], [0], [0], [1], [0, 0, 1, 1], [], []>} : vector<128x128xf32>, vector<128x128xf32>, vector<128x128xf32> -> vector<128x128xf32>
    %82 = math.absf %81 : vector<128x128xf32>
    %83 = vector.shape_cast %82 : vector<128x128xf32> to vector<1x128x128xf32>
    %cst_36 = arith.constant dense<0xFF800000> : vector<1xf32>
    %84 = vector.multi_reduction <maximumf>, %83, %cst_36 [1, 2] : vector<1x128x128xf32> to vector<1xf32>
    %85 = vector.shape_cast %84 : vector<1xf32> to vector<1x1x1xf32>
    %86 = vector.extract %85[0, 0, 0] : f32 from vector<1x1x1xf32>
    %cst_37 = arith.constant 1.000000e-30 : f32
    %87 = arith.maximumf %86, %cst_37 : f32
    %cst_38 = arith.constant 1.000000e+00 : f32
    %88 = arith.divf %cst_38, %87 : f32
    %89 = vector.broadcast %88 : f32 to vector<128x128xf32>
    %90 = arith.mulf %81, %89 : vector<128x128xf32>
    %cst_39 = arith.constant dense<0.000000e+00> : vector<128x128xf32>
    %91 = tpu.matmul %90, %90, %cst_39 {dimension_numbers = #tpu.dot_dimension_numbers<[1], [0], [0], [1], [0, 0, 1, 1], [], []>} : vector<128x128xf32>, vector<128x128xf32>, vector<128x128xf32> -> vector<128x128xf32>
    %cst_40 = arith.constant dense<0.000000e+00> : vector<128x128xf32>
    %92 = tpu.matmul %91, %91, %cst_40 {dimension_numbers = #tpu.dot_dimension_numbers<[1], [0], [0], [1], [0, 0, 1, 1], [], []>} : vector<128x128xf32>, vector<128x128xf32>, vector<128x128xf32> -> vector<128x128xf32>
    %cst_41 = arith.constant dense<0.000000e+00> : vector<128x128xf32>
    %93 = tpu.matmul %92, %92, %cst_41 {dimension_numbers = #tpu.dot_dimension_numbers<[1], [0], [0], [1], [0, 0, 1, 1], [], []>} : vector<128x128xf32>, vector<128x128xf32>, vector<128x128xf32> -> vector<128x128xf32>
    %94 = math.absf %93 : vector<128x128xf32>
    %95 = vector.shape_cast %94 : vector<128x128xf32> to vector<1x128x128xf32>
    %cst_42 = arith.constant dense<0xFF800000> : vector<1xf32>
    %96 = vector.multi_reduction <maximumf>, %95, %cst_42 [1, 2] : vector<1x128x128xf32> to vector<1xf32>
    %97 = vector.shape_cast %96 : vector<1xf32> to vector<1x1x1xf32>
    %98 = vector.extract %97[0, 0, 0] : f32 from vector<1x1x1xf32>
    %cst_43 = arith.constant 1.000000e-30 : f32
    %99 = arith.maximumf %98, %cst_43 : f32
    %cst_44 = arith.constant 1.000000e+00 : f32
    %100 = arith.divf %cst_44, %99 : f32
    %101 = vector.broadcast %100 : f32 to vector<128x128xf32>
    %102 = arith.mulf %93, %101 : vector<128x128xf32>
    %cst_45 = arith.constant dense<0.000000e+00> : vector<128x128xf32>
    %103 = tpu.matmul %102, %102, %cst_45 {dimension_numbers = #tpu.dot_dimension_numbers<[1], [0], [0], [1], [0, 0, 1, 1], [], []>} : vector<128x128xf32>, vector<128x128xf32>, vector<128x128xf32> -> vector<128x128xf32>
    %cst_46 = arith.constant dense<0.000000e+00> : vector<128x128xf32>
    %104 = tpu.matmul %103, %103, %cst_46 {dimension_numbers = #tpu.dot_dimension_numbers<[1], [0], [0], [1], [0, 0, 1, 1], [], []>} : vector<128x128xf32>, vector<128x128xf32>, vector<128x128xf32> -> vector<128x128xf32>
    %cst_47 = arith.constant dense<0.000000e+00> : vector<128x128xf32>
    %105 = tpu.matmul %104, %104, %cst_47 {dimension_numbers = #tpu.dot_dimension_numbers<[1], [0], [0], [1], [0, 0, 1, 1], [], []>} : vector<128x128xf32>, vector<128x128xf32>, vector<128x128xf32> -> vector<128x128xf32>
    %106 = math.absf %105 : vector<128x128xf32>
    %107 = vector.shape_cast %106 : vector<128x128xf32> to vector<1x128x128xf32>
    %cst_48 = arith.constant dense<0xFF800000> : vector<1xf32>
    %108 = vector.multi_reduction <maximumf>, %107, %cst_48 [1, 2] : vector<1x128x128xf32> to vector<1xf32>
    %109 = vector.shape_cast %108 : vector<1xf32> to vector<1x1x1xf32>
    %110 = vector.extract %109[0, 0, 0] : f32 from vector<1x1x1xf32>
    %cst_49 = arith.constant 1.000000e-30 : f32
    %111 = arith.maximumf %110, %cst_49 : f32
    %cst_50 = arith.constant 1.000000e+00 : f32
    %112 = arith.divf %cst_50, %111 : f32
    %113 = vector.broadcast %112 : f32 to vector<128x128xf32>
    %114 = arith.mulf %105, %113 : vector<128x128xf32>
    %115 = tpu.iota {dimensions = array<i32: 1>} : vector<1x128xi32>
    %116 = arith.sitofp %115 : vector<1x128xi32> to vector<1x128xf32>
    %cst_51 = arith.constant 1.000000e-03 : f32
    %117 = vector.broadcast %cst_51 : f32 to vector<1x128xf32>
    %118 = arith.mulf %117, %116 : vector<1x128xf32>
    %cst_52 = arith.constant 1.000000e+00 : f32
    %119 = vector.broadcast %cst_52 : f32 to vector<1x128xf32>
    %120 = arith.addf %119, %118 : vector<1x128xf32>
    %cst_53 = arith.constant dense<0.000000e+00> : vector<1x128xf32>
    %121 = tpu.matmul %120, %114, %cst_53 {dimension_numbers = #tpu.dot_dimension_numbers<[1], [0], [0], [1], [0, 0, 1, 1], [], []>} : vector<1x128xf32>, vector<128x128xf32>, vector<1x128xf32> -> vector<1x128xf32>
    %122 = arith.mulf %121, %121 : vector<1x128xf32>
    %123 = vector.shape_cast %122 : vector<1x128xf32> to vector<1x1x128xf32>
    %cst_54 = arith.constant dense<0.000000e+00> : vector<1xf32>
    %124 = vector.multi_reduction <add>, %123, %cst_54 [1, 2] : vector<1x1x128xf32> to vector<1xf32>
    %125 = vector.shape_cast %124 : vector<1xf32> to vector<1x1x1xf32>
    %126 = vector.extract %125[0, 0, 0] : f32 from vector<1x1x1xf32>
    %cst_55 = arith.constant 1.000000e-30 : f32
    %127 = arith.addf %126, %cst_55 : f32
    %128 = math.rsqrt %127 : f32
    %129 = vector.broadcast %128 : f32 to vector<1x128xf32>
    %130 = arith.mulf %121, %129 : vector<1x128xf32>
    %cst_56 = arith.constant dense<0.000000e+00> : vector<1x128xf32>
    %131 = tpu.matmul %130, %45, %cst_56 {dimension_numbers = #tpu.dot_dimension_numbers<[1], [0], [0], [1], [0, 0, 1, 1], [], []>} : vector<1x128xf32>, vector<128x128xf32>, vector<1x128xf32> -> vector<1x128xf32>
    %132 = arith.mulf %131, %131 : vector<1x128xf32>
    %133 = vector.shape_cast %132 : vector<1x128xf32> to vector<1x1x128xf32>
    %cst_57 = arith.constant dense<0.000000e+00> : vector<1xf32>
    %134 = vector.multi_reduction <add>, %133, %cst_57 [1, 2] : vector<1x1x128xf32> to vector<1xf32>
    %135 = vector.shape_cast %134 : vector<1xf32> to vector<1x1x1xf32>
    %136 = vector.extract %135[0, 0, 0] : f32 from vector<1x1x1xf32>
    %cst_58 = arith.constant 1.000000e-30 : f32
    %137 = arith.addf %136, %cst_58 : f32
    %138 = math.rsqrt %137 : f32
    %139 = vector.broadcast %138 : f32 to vector<1x128xf32>
    %140 = arith.mulf %131, %139 : vector<1x128xf32>
    %cst_59 = arith.constant dense<0.000000e+00> : vector<1x128xf32>
    %141 = tpu.matmul %140, %45, %cst_59 {dimension_numbers = #tpu.dot_dimension_numbers<[1], [0], [0], [1], [0, 0, 1, 1], [], []>} : vector<1x128xf32>, vector<128x128xf32>, vector<1x128xf32> -> vector<1x128xf32>
    %142 = arith.mulf %141, %141 : vector<1x128xf32>
    %143 = vector.shape_cast %142 : vector<1x128xf32> to vector<1x1x128xf32>
    %cst_60 = arith.constant dense<0.000000e+00> : vector<1xf32>
    %144 = vector.multi_reduction <add>, %143, %cst_60 [1, 2] : vector<1x1x128xf32> to vector<1xf32>
    %145 = vector.shape_cast %144 : vector<1xf32> to vector<1x1x1xf32>
    %146 = vector.extract %145[0, 0, 0] : f32 from vector<1x1x1xf32>
    %cst_61 = arith.constant 1.000000e-30 : f32
    %147 = arith.addf %146, %cst_61 : f32
    %148 = math.rsqrt %147 : f32
    %149 = vector.broadcast %148 : f32 to vector<1x128xf32>
    %150 = arith.mulf %141, %149 : vector<1x128xf32>
    %151 = vector.broadcast %3 : f32 to vector<1x128xf32>
    %152 = arith.mulf %151, %150 : vector<1x128xf32>
    %153 = arith.addf %1, %152 : vector<1x128xf32>
    %c0_62 = arith.constant 0 : index
    %c0_63 = arith.constant 0 : index
    %154 = vector.load %arg4[%c0_62, %c0_63] : memref<1x128xf32, #tpu.memory_space<vmem>>, vector<1x128xf32>
    tpu.vector_store %arg4[%c0_62, %c0_63], %153 {strides = array<i32>} : memref<1x128xf32, #tpu.memory_space<vmem>>, vector<1x128xf32>,
    return
  }
}

</mosaic_0001>

<bundles_post_ra>
// kernel: tpu_custom_call.1
= control target key start
LH: loop header
LB: loop body
LE: loop exit
PB: predicated region body
PF: predicated region fallthrough
CT: control target
= control target key end

     0   :  { %12 = vsyncpa [#allocation4], 0  ;;  %s3096_s0 = inlined_call_operand.hbm [shape: f32[256,128], index: 0, kind: input, shape index: {}]   ;;  %s3097_s1 = inlined_call_operand.vmem [shape: f32[1,128], index: 1, kind: input, shape index: {}]   ;;  %s3098_s2 = inlined_call_operand.vmem [shape: f32[1,256], index: 2, kind: input, shape index: {}]   ;;  %s3099_s3 = inlined_call_operand.<no memory space> [shape: f32[1], index: 3, kind: input, shape index: {}]   ;;  %s3100_s4 = inlined_call_operand.hbm [shape: f32[1,128], index: 4, kind: output, shape index: {0}]   ;;  %s3101_s5 = inlined_call_operand.hbm [shape: f32[1,1], index: 5, kind: output, shape index: {1}]  }
   0x1   :  { %13 = vsyncpa [#allocation5], 0 }
   0x2   :  { %14 = vsyncpa [#allocation8], 0  ;;  %s19_s20 = sshll.u32 %s3096_s0, 4  ;;  %s2356_s21 = smov [#allocation3]   ;;  %s20_s20 = int_to_ptr.hbm [resolvable:$true] %s19_s20 }
   0x3   :  { %s21_s22 = sshll.u32 %s2356_s21, 4  ;;  %s2357_s23 = smov 128   ;;  %s22_s22 = int_to_ptr.vmem [resolvable:$true] %s21_s22 }
   0x4   :  { %s2358_s24 = smov 8  }
   0x5   :  { %27 = dma.hbm_to_vmem [thread:$0]  %s20_s20, 4096, %s22_s22, [#allocation4], %s2357_s23, %s2357_s23, %s2358_s24  }
   0x6   :  { %2350 = dma.done.wait [#allocation4], 4096  }
   0x7   :  { %2351 = vsyncadd [#allocation4], 4294963200  ;;  %v2397_v0 = vld [vmem:[#allocation3] sm:$0xff]  ;;  %v2400_v1 = vld [vmem:[#allocation3 + $0x8] sm:$0xff]  ;;  %vm122_vm0 = vcmask 1040384  }
   0x8   :  { %203 = vxpose.xlu0.b32.start [1/16] %v2397_v0, 128  ;;  %v2403_v2 = vld [vmem:[#allocation3 + $0x10] sm:$0xff]  ;;  %v2406_v3 = vld [vmem:[#allocation3 + $0x18] sm:$0xff]  ;;  %v2409_v4 = vld [vmem:[#allocation3 + $0x20] sm:$0xff]  ;;  %s2360_s12 = smov 1e-30  }
   0x9   :  { %v2412_v5 = vld [vmem:[#allocation3 + $0x28] sm:$0xff]  ;;  %v44_v6 = vld [vmem:[#allocation3 + $0x30] sm:$0xff]  ;;  %v45_v7 = vld [vmem:[#allocation3 + $0x38] sm:$0xff] }
   0xa   :  { %v46_v8 = vld [vmem:[#allocation3 + $0x40] sm:$0xff]  ;;  %v47_v9 = vld [vmem:[#allocation3 + $0x48] sm:$0xff]  ;;  %v48_v10 = vld [vmem:[#allocation3 + $0x50] sm:$0xff] }
   0xb   :  { %v53_v11 = vld [vmem:[#allocation3 + $0x78] sm:$0xff]  ;;  %v52_v12 = vld [vmem:[#allocation3 + $0x70] sm:$0xff]  ;;  %v51_v13 = vld [vmem:[#allocation3 + $0x68] sm:$0xff] }
   0xc   :  { %267 = vmatpush.msra.mxu2 %v53_v11  ;;  %2152 = vmatpush.msra.mxu3 %v53_v11  ;;  %v49_v14 = vld [vmem:[#allocation3 + $0x58] sm:$0xff]  ;;  %v50_v15 = vld [vmem:[#allocation3 + $0x60] sm:$0xff]  ;;  %v68_v22 = vld [vmem:[#allocation3 + $0xf0] sm:$0xff] }
   0xd   :  { %73 = vmatpush.xpose.msra.mxu0 %v53_v11  ;;  %v69_v20 = vld [vmem:[#allocation3 + $0xf8] sm:$0xff]  ;;  %v67_v23 = vld [vmem:[#allocation3 + $0xe8] sm:$0xff]  ;;  %v66_v24 = vld [vmem:[#allocation3 + $0xe0] sm:$0xff] }
   0xe   :  { %268 = vmatpush.msra.mxu2 %v52_v12  ;;  %2153 = vmatpush.msra.mxu3 %v52_v12  ;;  %v65_v26 = vld [vmem:[#allocation3 + $0xd8] sm:$0xff]  ;;  %v64_v27 = vld [vmem:[#allocation3 + $0xd0] sm:$0xff]  ;;  %v63_v28 = vld [vmem:[#allocation3 + $0xc8] sm:$0xff] }
   0xf   :  { %93 = vmatpush.xpose.msra.mxu1 %v69_v20  ;;  %v62_v29 = vld [vmem:[#allocation3 + $0xc0] sm:$0xff]  ;;  %v61_v31 = vld [vmem:[#allocation3 + $0xb8] sm:$0xff]  ;;  %v60_v32 = vld [vmem:[#allocation3 + $0xb0] sm:$0xff] }
  0x10   :  { %204 = vxpose.xlu0.b32.cont [2/16] %v2400_v1, 128  ;;  %269 = vmatpush.msra.mxu2 %v51_v13  ;;  %v59_v33 = vld [vmem:[#allocation3 + $0xa8] sm:$0xff]  ;;  %v58_v34 = vld [vmem:[#allocation3 + $0xa0] sm:$0xff]  ;;  %v57_v36 = vld [vmem:[#allocation3 + $0x98] sm:$0xff] }
  0x11   :  { %2154 = vmatpush.msra.mxu3 %v51_v13  ;;  %74 = vmatpush.xpose.msra.mxu0 %v52_v12  ;;  %v56_v37 = vld [vmem:[#allocation3 + $0x90] sm:$0xff]  ;;  %v55_v38 = vld [vmem:[#allocation3 + $0x88] sm:$0xff]  ;;  %v54_v39 = vld [vmem:[#allocation3 + $0x80] sm:$0xff] }
  0x12   :  { %270 = vmatpush.msra.mxu2 %v50_v15  ;;  %v2436_v44 = vld [vmem:[%s3097_s1] sm:$0x1] }
  0x13   :  { %2155 = vmatpush.msra.mxu3 %v50_v15  ;;  %94 = vmatpush.xpose.msra.mxu1 %v68_v22  ;;  %v71_v50 = vld [vmem:[%s3098_s2] sm:$0x3] }
  0x14   :  { %271 = vmatpush.msra.mxu2 %v49_v14  ;;  %v114_v51 = vperm.slane %v71_v50, 0  ;;  %v115_v52 = vperm.slane %v71_v50, 1 }
  0x15   :  { %2156 = vmatpush.msra.mxu3 %v49_v14  ;;  %75 = vmatpush.xpose.msra.mxu0 %v51_v13 }
  0x16   :  { %272 = vmatpush.msra.mxu2 %v48_v10 }
  0x17   :  { %2157 = vmatpush.msra.mxu3 %v48_v10  ;;  %95 = vmatpush.xpose.msra.mxu1 %v67_v23 }
  0x18   :  { %205 = vxpose.xlu0.b32.cont [3/16] %v2403_v2, 128  ;;  %273 = vmatpush.msra.mxu2 %v47_v9 }
  0x19   :  { %2158 = vmatpush.msra.mxu3 %v47_v9  ;;  %76 = vmatpush.xpose.msra.mxu0 %v50_v15 }
  0x1a   :  { %274 = vmatpush.msra.mxu2 %v46_v8 }
  0x1b   :  { %2159 = vmatpush.msra.mxu3 %v46_v8  ;;  %96 = vmatpush.xpose.msra.mxu1 %v66_v24 }
  0x1c   :  { %275 = vmatpush.msra.mxu2 %v45_v7 }
  0x1d   :  { %2160 = vmatpush.msra.mxu3 %v45_v7  ;;  %77 = vmatpush.xpose.msra.mxu0 %v49_v14 }
  0x1e   :  { %276 = vmatpush.msra.mxu2 %v44_v6 }
  0x1f   :  { %2161 = vmatpush.msra.mxu3 %v44_v6  ;;  %97 = vmatpush.xpose.msra.mxu1 %v65_v26 }
  0x20   :  { %206 = vxpose.xlu0.b32.cont [4/16] %v2406_v3, 128  ;;  %277 = vmatpush.msra.mxu2 %v2412_v5 }
  0x21   :  { %2162 = vmatpush.msra.mxu3 %v2412_v5  ;;  %78 = vmatpush.xpose.msra.mxu0 %v48_v10 }
  0x22   :  { %278 = vmatpush.msra.mxu2 %v2409_v4 }
  0x23   :  { %2163 = vmatpush.msra.mxu3 %v2409_v4  ;;  %98 = vmatpush.xpose.msra.mxu1 %v64_v27 }
  0x24   :  { %279 = vmatpush.msra.mxu2 %v2406_v3 }
  0x25   :  { %2164 = vmatpush.msra.mxu3 %v2406_v3  ;;  %79 = vmatpush.xpose.msra.mxu0 %v47_v9 }
  0x26   :  { %280 = vmatpush.msra.mxu2 %v2403_v2 }
  0x27   :  { %2165 = vmatpush.msra.mxu3 %v2403_v2  ;;  %99 = vmatpush.xpose.msra.mxu1 %v63_v28 }
  0x28   :  { %207 = vxpose.xlu0.b32.cont [5/16] %v2409_v4, 128  ;;  %281 = vmatpush.msra.mxu2 %v2400_v1 }
  0x29   :  { %2166 = vmatpush.msra.mxu3 %v2400_v1  ;;  %80 = vmatpush.xpose.msra.mxu0 %v46_v8 }
  0x2a   :  { %282 = vmatpush.msra.mxu2 %v2397_v0 }
  0x2b   :  { %2167 = vmatpush.msra.mxu3 %v2397_v0  ;;  %100 = vmatpush.xpose.msra.mxu1 %v62_v29 }
  0x2d   :  { %81 = vmatpush.xpose.msra.mxu0 %v45_v7  ;;  %2171 = vmatpush.lsf.msrb.mxu3 %v69_v20 }
  0x2f   :  { %2172 = vmatpush.lsf.msrb.mxu3 %v68_v22  ;;  %101 = vmatpush.xpose.msra.mxu1 %v61_v31 }
  0x30   :  { %208 = vxpose.xlu0.b32.cont [6/16] %v2412_v5, 128 }
  0x31   :  { %82 = vmatpush.xpose.msra.mxu0 %v44_v6  ;;  %2173 = vmatpush.lsf.msrb.mxu3 %v67_v23 }
  0x33   :  { %2174 = vmatpush.lsf.msrb.mxu3 %v66_v24  ;;  %102 = vmatpush.xpose.msra.mxu1 %v60_v32 }
  0x35   :  { %83 = vmatpush.xpose.msra.mxu0 %v2412_v5  ;;  %2175 = vmatpush.lsf.msrb.mxu3 %v65_v26 }
  0x37   :  { %2176 = vmatpush.lsf.msrb.mxu3 %v64_v27  ;;  %103 = vmatpush.xpose.msra.mxu1 %v59_v33 }
  0x38   :  { %209 = vxpose.xlu0.b32.cont [7/16] %v44_v6, 128 }
  0x39   :  { %84 = vmatpush.xpose.msra.mxu0 %v2409_v4  ;;  %2177 = vmatpush.lsf.msrb.mxu3 %v63_v28 }
  0x3b   :  { %2178 = vmatpush.lsf.msrb.mxu3 %v62_v29  ;;  %104 = vmatpush.xpose.msra.mxu1 %v58_v34 }
  0x3d   :  { %85 = vmatpush.xpose.msra.mxu0 %v2406_v3  ;;  %2179 = vmatpush.lsf.msrb.mxu3 %v61_v31  ;;  %v152_v3 = vlaneseq }
  0x3f   :  { %2180 = vmatpush.lsf.msrb.mxu3 %v60_v32  ;;  %105 = vmatpush.xpose.msra.mxu1 %v57_v36  ;;  %v2455_v5 = vshrl.u32 %v152_v3, 7  ;;  %v2457_v6 = vand.u32 127, %v152_v3 }
  0x40   :  { %210 = vxpose.xlu0.b32.cont [8/16] %v45_v7, 128 }
  0x41   :  { %86 = vmatpush.xpose.msra.mxu0 %v2403_v2  ;;  %2181 = vmatpush.lsf.msrb.mxu3 %v59_v33  ;;  %3106 = vst [vmem:[#allocation12_spill] sm:$0xff] %v2457_v6  ;;  %vm171_vm1 = vcmp.eq.s32.totalorder %v2455_v5, %v2457_v6 }
  0x43   :  { %2182 = vmatpush.lsf.msrb.mxu3 %v58_v34  ;;  %106 = vmatpush.xpose.msra.mxu1 %v56_v37 }
  0x45   :  { %87 = vmatpush.xpose.msra.mxu0 %v2400_v1  ;;  %2183 = vmatpush.lsf.msrb.mxu3 %v57_v36 }
  0x47   :  { %2184 = vmatpush.lsf.msrb.mxu3 %v56_v37  ;;  %107 = vmatpush.xpose.msra.mxu1 %v55_v38 }
  0x48   :  { %211 = vxpose.xlu0.b32.cont [9/16] %v46_v8, 128  ;;  %v2359_v8 = vmov 0.0  }
  0x49   :  { %88 = vmatpush.xpose.msra.mxu0 %v2397_v0  ;;  %2185 = vmatpush.lsf.msrb.mxu3 %v55_v38 }
  0x4b   :  { %2186 = vmatpush.lsf.msrb.mxu3 %v54_v39  ;;  %108 = vmatpush.xpose.msra.mxu1 %v54_v39 }
  0x4c   :  { %2187 = vllmr.16.mxu3  ;;  %89 = vmatmul.f32.vlgmr.msra.gmra.mxu0 %v2436_v44 }
  0x4e   :  { %109 = vmatmul.f32.vlgmr.msra.gmra.mxu1 %v2436_v44 }
  0x50   :  { %212 = vxpose.xlu0.b32.cont [10/16] %v47_v9, 128  ;;  %v2464_v9 = vsel %vm171_vm1, 1.0, %v2359_v8 }
  0x58   :  { %213 = vxpose.xlu0.b32.cont [11/16] %v48_v10, 128  ;;  %v154_v10 = vadd.s32 8, %v2455_v5 }
  0x5a   :  { %vm172_vm2 = vcmp.eq.s32.totalorder %v154_v10, %v2457_v6 }
  0x60   :  { %214 = vxpose.xlu0.b32.cont [12/16] %v49_v14, 128 }
  0x68   :  { %215 = vxpose.xlu0.b32.cont [13/16] %v50_v15, 128 }
  0x70   :  { %216 = vxpose.xlu0.b32.cont [14/16] %v51_v13, 128 }
  0x78   :  { %217 = vxpose.xlu0.b32.cont [15/16] %v52_v12, 128 }
  0x80   :  { %218 = vxpose.xlu0.b32.end [16/16] %v53_v11, 128 }
  0xac   :  { %v219_v16 = vpop.trf.xlu0 }
  0xad   :  { %283 = vmatmul.f32.vlgmr.msra.gmra.mxu2 %v219_v16  ;;  %v2473_v16 = vsel %vm172_vm2, 1.0, %v2359_v8  ;;  %vm150_vm2 = vcmask 0  }
  0xb4   :  { %v220_v17 = vpop.trf.xlu0 }
  0xb5   :  { %286 = vmatmul.f32.gmra.mxu2 %v220_v17  ;;  %v155_v17 = vadd.s32 16, %v2455_v5 }
  0xb7   :  { %vm173_vm3 = vcmp.eq.s32.totalorder %v155_v17, %v2457_v6 }
  0xbc   :  { %v221_v18 = vpop.trf.xlu0 }
  0xbd   :  { %289 = vmatmul.f32.gmra.mxu2 %v221_v18 }
  0xc4   :  { %v222_v19 = vpop.trf.xlu0 }
  0xc5   :  { %292 = vmatmul.f32.gmra.mxu2 %v222_v19 }
  0xc9   :  { %v90_v53 = vpop.f32.mrf.mxu0 }
  0xca   :  { %v118_v54 = vsub.f32 %v90_v53, %v114_v51  ;;  %v160_v53 = vadd.s32 56, %v2455_v5 }
  0xcb   :  { %v110_v55 = vpop.f32.mrf.mxu1 }
  0xcc   :  { %v223_v21 = vpop.trf.xlu0  ;;  %v120_v56 = vmul.f32 %v118_v54, %v118_v54  ;;  %v119_v57 = vsub.f32 %v110_v55, %v115_v52  ;;  %vm178_vm8 = vcmp.eq.s32.totalorder %v160_v53, %v2457_v6 }
  0xcd   :  { %295 = vmatmul.f32.gmra.mxu2 %v223_v21 }
  0xce   :  { %v121_v59 = vmul.f32 %v119_v57, %v119_v57  ;;  %v123_v60 = vsel %vm122_vm0, %v120_v56, 0.0 }
  0xd0   :  { %v124_v61 = vsel %vm122_vm0, %v121_v59, 0.0 }
  0xd1   :  { %v125_v62 = vadd.f32 %v124_v61, %v123_v60  ;;  %v2527_v60 = vsel %vm178_vm8, 1.0, %v2359_v8  ;;  %v161_v61 = vadd.s32 64, %v2455_v5 }
  0xd3   :  { %126 = vadd.xlane.f32.xlu1 %v125_v62  ;;  %vm179_vm9 = vcmp.eq.s32.totalorder %v161_v61, %v2457_v6 }
  0xd4   :  { %v224_v25 = vpop.trf.xlu0 }
  0xd5   :  { %298 = vmatmul.f32.gmra.mxu2 %v224_v25 }
  0xdc   :  { %v225_v30 = vpop.trf.xlu0 }
  0xdd   :  { %301 = vmatmul.f32.gmra.mxu2 %v225_v30 }
  0xe4   :  { %v226_v35 = vpop.trf.xlu0 }
  0xe5   :  { %304 = vmatmul.f32.gmra.mxu2 %v226_v35 }
  0xec   :  { %v227_v40 = vpop.trf.xlu0 }
  0xed   :  { %307 = vmatmul.f32.gmra.mxu2 %v227_v40 }
  0xf4   :  { %v228_v41 = vpop.trf.xlu0 }
  0xf5   :  { %310 = vmatmul.f32.gmra.mxu2 %v228_v41 }
  0xfc   :  { %v229_v42 = vpop.trf.xlu0 }
  0xfd   :  { %313 = vmatmul.f32.vlgmr.msra.gmra.mxu3 %v229_v42 }
  0xfe   :  { %332 = vmatpush.msra.mxu3 %v69_v20 }
 0x100   :  { %333 = vmatpush.msra.mxu3 %v68_v22 }
 0x102   :  { %334 = vmatpush.msra.mxu3 %v67_v23  ;;  %v2482_v23 = vsel %vm173_vm3, 1.0, %v2359_v8 }
 0x104   :  { %v230_v43 = vpop.trf.xlu0  ;;  %335 = vmatpush.msra.mxu3 %v66_v24  ;;  %v156_v24 = vadd.s32 24, %v2455_v5 }
 0x105   :  { %316 = vmatmul.f32.gmra.mxu3 %v230_v43 }
 0x106   :  { %336 = vmatpush.msra.mxu3 %v65_v26  ;;  %vm174_vm4 = vcmp.eq.s32.totalorder %v156_v24, %v2457_v6 }
 0x107   :  { %v2491_v30 = vsel %vm174_vm4, 1.0, %v2359_v8 }
 0x108   :  { %337 = vmatpush.msra.mxu3 %v64_v27 }
 0x10a   :  { %338 = vmatpush.msra.mxu3 %v63_v28 }
 0x10c   :  { %v231_v45 = vpop.trf.xlu0  ;;  %339 = vmatpush.msra.mxu3 %v62_v29 }
 0x10d   :  { %319 = vmatmul.f32.gmra.mxu3 %v231_v45  ;;  %v159_v45 = vadd.s32 48, %v2455_v5 }
 0x10e   :  { %340 = vmatpush.msra.mxu3 %v61_v31  ;;  %v157_v31 = vadd.s32 32, %v2455_v5 }
 0x10f   :  { %vm177_vm7 = vcmp.eq.s32.totalorder %v159_v45, %v2457_v6 }
 0x110   :  { %341 = vmatpush.msra.mxu3 %v60_v32  ;;  %vm175_vm5 = vcmp.eq.s32.totalorder %v157_v31, %v2457_v6  ;;  %v2518_v52 = vsel %vm177_vm7, 1.0, %v2359_v8  ;;  %v164_v31 = vadd.s32 88, %v2455_v5 }
 0x112   :  { %342 = vmatpush.msra.mxu3 %v59_v33  ;;  %vm182_vm12 = vcmp.eq.s32.totalorder %v164_v31, %v2457_v6 }
 0x114   :  { %v232_v46 = vpop.trf.xlu0  ;;  %343 = vmatpush.msra.mxu3 %v58_v34 }
 0x115   :  { %322 = vmatmul.f32.gmra.mxu3 %v232_v46 }
 0x116   :  { %344 = vmatpush.msra.mxu3 %v57_v36  ;;  %v2500_v36 = vsel %vm175_vm5, 1.0, %v2359_v8 }
 0x118   :  { %345 = vmatpush.msra.mxu3 %v56_v37 }
 0x11a   :  { %346 = vmatpush.msra.mxu3 %v55_v38  ;;  %v158_v38 = vadd.s32 40, %v2455_v5 }
 0x11c   :  { %v233_v47 = vpop.trf.xlu0  ;;  %347 = vmatpush.msra.mxu3 %v54_v39  ;;  %vm176_vm6 = vcmp.eq.s32.totalorder %v158_v38, %v2457_v6  ;;  %v2564_v38 = vsel %vm182_vm12, 1.0, %v2359_v8 }
 0x11d   :  { %325 = vmatmul.f32.gmra.mxu3 %v233_v47  ;;  %v2509_v43 = vsel %vm176_vm6, 1.0, %v2359_v8 }
 0x124   :  { %v234_v48 = vpop.trf.xlu0 }
 0x125   :  { %328 = vmatmul.f32.gmra.mxu3 %v234_v48 }
 0x12d   :  { %2188 = vmatmul.lmr.bf16.vlgmr.msra.gmra.16.mxu3 }
 0x130   :  { %v284_v1 = vpop.f32.mrf.mxu2 }
 0x131   :  { %v285_v12 = vadd.f32 %v284_v1, %v2464_v9 }
 0x135   :  { %2189 = vmatmul.lmr.bf16.gmra.16.mxu3 }
 0x138   :  { %v287_v4 = vpop.f32.mrf.mxu2 }
 0x139   :  { %v288_v18 = vadd.f32 %v287_v4, %v2473_v16 }
 0x13d   :  { %2190 = vmatmul.lmr.bf16.gmra.16.mxu3 }
 0x140   :  { %v290_v11 = vpop.f32.mrf.mxu2 }
 0x141   :  { %v291_v25 = vadd.f32 %v290_v11, %v2482_v23  ;;  %v2536_v11 = vsel %vm179_vm9, 1.0, %v2359_v8 }
 0x145   :  { %2191 = vmatmul.lmr.bf16.gmra.16.mxu3 }
 0x148   :  { %v293_v19 = vpop.f32.mrf.mxu2 }
 0x149   :  { %v294_v32 = vadd.f32 %v293_v19, %v2491_v30 }
 0x14d   :  { %2192 = vmatmul.lmr.bf16.gmra.16.mxu3 }
 0x150   :  { %v296_v28 = vpop.f32.mrf.mxu2 }
 0x151   :  { %v297_v39 = vadd.f32 %v296_v28, %v2500_v36 }
 0x155   :  { %2193 = vmatmul.lmr.bf16.gmra.16.mxu3 }
 0x158   :  { %v299_v37 = vpop.f32.mrf.mxu2 }
 0x159   :  { %v300_v47 = vadd.f32 %v299_v37, %v2509_v43 }
 0x15d   :  { %2194 = vmatmul.lmr.bf16.gmra.16.mxu3 }
 0x160   :  { %v302_v46 = vpop.f32.mrf.mxu2 }
 0x161   :  { %v303_v54 = vadd.f32 %v302_v46, %v2518_v52 }
 0x165   :  { %2195 = vmatmul.lmr.bf16.gmra.16.mxu3 }
 0x168   :  { %v305_v55 = vpop.f32.mrf.mxu2 }
 0x169   :  { %v306_v62 = vadd.f32 %v305_v55, %v2527_v60 }
 0x16d   :  { %2196 = vmatmul.lmr.bf16.gmra.16.mxu3 }
 0x170   :  { %v308_v4 = vpop.f32.mrf.mxu2 }
 0x175   :  { %2197 = vmatmul.lmr.bf16.gmra.16.mxu3 }
 0x17d   :  { %2198 = vmatmul.lmr.bf16.gmra.16.mxu3 }
 0x180   :  { %v2440_v49 = vpop.f32.mrf.mxu3 }
 0x185   :  { %2199 = vmatmul.lmr.bf16.gmra.16.mxu3 }
 0x188   :  { %v2445_v58 = vpop.f32.mrf.mxu3 }
 0x18d   :  { %2200 = vmatmul.lmr.bf16.gmra.16.mxu3 }
 0x190   :  { %v2449_v63 = vpop.f32.mrf.mxu3 }
 0x195   :  { %2201 = vmatmul.lmr.bf16.gmra.16.mxu3 }
 0x198   :  { %v2451_v0 = vpop.f32.mrf.mxu3 }
 0x19d   :  { %2202 = vmatmul.lmr.bf16.gmra.16.mxu3 }
 0x1a0   :  { %v2453_v2 = vpop.f32.mrf.mxu3 }
 0x1a5   :  { %2203 = vmatmul.lmr.bf16.gmra.16.mxu3 }
 0x1a8   :  { %v2459_v7 = vpop.f32.mrf.mxu3 }
 0x1b0   :  { %v349_v13 = vpop.f32.mrf.mxu3 }
 0x1b1   :  { %v2469_v14 = vadd.f32 %v349_v13, %v285_v12  ;;  %v162_v12 = vadd.s32 72, %v2455_v5  ;;  %v309_v13 = vadd.f32 %v308_v4, %v2536_v11  ;;  %v167_v4 = vadd.s32 112, %v2455_v5 }
 0x1b3   :  { %v397_v15 = vand.u32 2147483647, %v2469_v14  ;;  %vm180_vm10 = vcmp.eq.s32.totalorder %v162_v12, %v2457_v6  ;;  %vm185_vm15 = vcmp.eq.s32.totalorder %v167_v4, %v2457_v6 }
 0x1b4   :  { %v2545_v19 = vsel %vm180_vm10, 1.0, %v2359_v8 }
 0x1b5   :  { %413 = vadd.xlane.f32.xlu1 %v397_v15 }
 0x1b8   :  { %v352_v20 = vpop.f32.mrf.mxu3 }
 0x1b9   :  { %v2478_v21 = vadd.f32 %v352_v20, %v288_v18  ;;  %v311_v20 = vpop.f32.mrf.mxu2 }
 0x1ba   :  { %v312_v24 = vadd.f32 %v311_v20, %v2545_v19 }
 0x1bb   :  { %v398_v22 = vand.u32 2147483647, %v2478_v21 }
 0x1bd   :  { %415 = vadd.xlane.f32.xlu1 %v398_v22  ;;  %v163_v22 = vadd.s32 80, %v2455_v5 }
 0x1bf   :  { %vm181_vm11 = vcmp.eq.s32.totalorder %v163_v22, %v2457_v6 }
 0x1c0   :  { %v355_v26 = vpop.f32.mrf.mxu3 }
 0x1c1   :  { %v2487_v27 = vadd.f32 %v355_v26, %v291_v25 }
 0x1c3   :  { %v399_v29 = vand.u32 2147483647, %v2487_v27  ;;  %v469_v53 = vmul.f32 %v2487_v27, %v2487_v27 }
 0x1c5   :  { %417 = vadd.xlane.f32.xlu2 %v399_v29  ;;  %v2554_v29 = vsel %vm181_vm11, 1.0, %v2359_v8 }
 0x1c8   :  { %v358_v33 = vpop.f32.mrf.mxu3 }
 0x1c9   :  { %v2496_v34 = vadd.f32 %v358_v33, %v294_v32  ;;  %v315_v32 = vadd.f32 %v2440_v49, %v2554_v29 }
 0x1cb   :  { %v400_v35 = vand.u32 2147483647, %v2496_v34 }
 0x1cd   :  { %419 = vadd.xlane.f32.xlu2 %v400_v35 }
 0x1d0   :  { %v361_v40 = vpop.f32.mrf.mxu3 }
 0x1d1   :  { %v2505_v41 = vadd.f32 %v361_v40, %v297_v39  ;;  %v165_v39 = vadd.s32 96, %v2455_v5  ;;  %v318_v40 = vadd.f32 %v2445_v58, %v2564_v38  ;;  %v467_v58 = vmul.f32 %v2469_v14, %v2469_v14 }
 0x1d3   :  { %v401_v42 = vand.u32 2147483647, %v2505_v41  ;;  %vm183_vm13 = vcmp.eq.s32.totalorder %v165_v39, %v2457_v6 }
 0x1d4   :  { %v2574_v46 = vsel %vm183_vm13, 1.0, %v2359_v8 }
 0x1d5   :  { %421 = vadd.xlane.f32.xlu1 %v401_v42 }
 0x1d8   :  { %v364_v48 = vpop.f32.mrf.mxu3 }
 0x1d9   :  { %v2514_v50 = vadd.f32 %v364_v48, %v300_v47  ;;  %v166_v47 = vadd.s32 104, %v2455_v5  ;;  %v468_v48 = vmul.f32 %v2478_v21, %v2478_v21 }
 0x1db   :  { %v402_v51 = vand.u32 2147483647, %v2514_v50  ;;  %vm184_vm14 = vcmp.eq.s32.totalorder %v166_v47, %v2457_v6  ;;  %v483_v55 = vadd.f32 %v468_v48, %v467_v58  ;;  %v472_v12 = vmul.f32 %v2514_v50, %v2514_v50 }
 0x1dd   :  { %423 = vadd.xlane.f32.xlu2 %v402_v51  ;;  %v321_v51 = vadd.f32 %v2449_v63, %v2574_v46  ;;  %v484_v61 = vadd.f32 %v483_v55, %v469_v53 }
 0x1e0   :  { %v367_v56 = vpop.f32.mrf.mxu3 }
 0x1e1   :  { %v2523_v57 = vadd.f32 %v367_v56, %v303_v54  ;;  %v470_v56 = vmul.f32 %v2496_v34, %v2496_v34 }
 0x1e3   :  { %v403_v59 = vand.u32 2147483647, %v2523_v57 }
 0x1e5   :  { %425 = vadd.xlane.f32.xlu1 %v403_v59 }
 0x1e8   :  { %v370_v1 = vpop.f32.mrf.mxu3 }
 0x1e9   :  { %v2532_v3 = vadd.f32 %v370_v1, %v306_v62  ;;  %v471_v62 = vmul.f32 %v2505_v41, %v2505_v41  ;;  %v2594_v1 = vsel %vm184_vm14, 1.0, %v2359_v8 }
 0x1eb   :  { %v404_v10 = vand.u32 2147483647, %v2532_v3 }
 0x1ed   :  { %427 = vadd.xlane.f32.xlu2 %v404_v10  ;;  %v485_v10 = vadd.f32 %v484_v61, %v470_v56 }
 0x1f0   :  { %v373_v15 = vpop.f32.mrf.mxu3 }
 0x1f1   :  { %v2541_v17 = vadd.f32 %v373_v15, %v309_v13  ;;  %v324_v13 = vadd.f32 %v2451_v0, %v2594_v1  ;;  %v486_v15 = vadd.f32 %v485_v10, %v471_v62  ;;  %v2612_v0 = vsel %vm185_vm15, 1.0, %v2359_v8 }
 0x1f3   :  { %v405_v18 = vand.u32 2147483647, %v2541_v17  ;;  %v487_v22 = vadd.f32 %v486_v15, %v472_v12  ;;  %v475_v31 = vmul.f32 %v2541_v17, %v2541_v17 }
 0x1f5   :  { %429 = vadd.xlane.f32.xlu1 %v405_v18  ;;  %v473_v18 = vmul.f32 %v2523_v57, %v2523_v57 }
 0x1f8   :  { %v376_v25 = vpop.f32.mrf.mxu3 }
 0x1f9   :  { %v2550_v26 = vadd.f32 %v376_v25, %v312_v24  ;;  %v474_v24 = vmul.f32 %v2532_v3, %v2532_v3 }
 0x1fb   :  { %v406_v28 = vand.u32 2147483647, %v2550_v26  ;;  %v476_v39 = vmul.f32 %v2550_v26, %v2550_v26 }
 0x1fd   :  { %431 = vadd.xlane.f32.xlu2 %v406_v28  ;;  %v488_v28 = vadd.f32 %v487_v22, %v473_v18  ;;  %v127_v22 = vpop.xlane.xlu1 %126 }
 0x200   :  { %v379_v33 = vpop.f32.mrf.mxu3 }
 0x201   :  { %v2560_v35 = vadd.f32 %v379_v33, %v315_v32  ;;  %v168_v33 = vadd.s32 120, %v2455_v5 }
 0x203   :  { %v407_v37 = vand.u32 2147483647, %v2560_v35  ;;  %vm186_vm1 = vcmp.eq.s32.totalorder %v168_v33, %v2457_v6 }
 0x205   :  { %433 = vadd.xlane.f32.xlu1 %v407_v37  ;;  %v489_v37 = vadd.f32 %v488_v28, %v474_v24  ;;  %v128_v24 = vrot.slane %v127_v22, 4 }
 0x207   :  { %v129_v28 = vadd.f32 %v128_v24, %v127_v22 }
 0x208   :  { %v382_v42 = vpop.f32.mrf.mxu3 }
 0x209   :  { %v2570_v49 = vadd.f32 %v382_v42, %v318_v40  ;;  %v327_v40 = vadd.f32 %v2453_v2, %v2612_v0  ;;  %v490_v42 = vadd.f32 %v489_v37, %v475_v31  ;;  %v2630_v2 = vsel %vm186_vm1, 1.0, %v2359_v8 }
 0x20a   :  { %v330_v61 = vadd.f32 %v2459_v7, %v2630_v2  ;;  %v130_v31 = vrot.slane %v129_v28, 2 }
 0x20b   :  { %v408_v45 = vand.u32 2147483647, %v2570_v49  ;;  %v491_v48 = vadd.f32 %v490_v42, %v476_v39 }
 0x20d   :  { %435 = vadd.xlane.f32.xlu2 %v408_v45  ;;  %v477_v45 = vmul.f32 %v2560_v35, %v2560_v35 }
 0x20f   :  { %v492_v58 = vadd.f32 %v491_v48, %v477_v45 }
 0x210   :  { %v385_v54 = vpop.f32.mrf.mxu3 }
 0x211   :  { %v2588_v59 = vadd.f32 %v385_v54, %v321_v51  ;;  %v478_v51 = vmul.f32 %v2570_v49, %v2570_v49 }
 0x213   :  { %v409_v63 = vand.u32 2147483647, %v2588_v59  ;;  %v479_v53 = vmul.f32 %v2588_v59, %v2588_v59  ;;  %v493_v55 = vadd.f32 %v492_v58, %v478_v51 }
 0x215   :  { %437 = vadd.xlane.f32.xlu1 %v409_v63  ;;  %v494_v63 = vadd.f32 %v493_v55, %v479_v53 }
 0x218   :  { %v388_v20 = vpop.f32.mrf.mxu3 }
 0x219   :  { %v2606_v25 = vadd.f32 %v388_v20, %v324_v13  ;;  %v136_v20 = vmul.f32 %v2436_v44, %v2436_v44 }
 0x21b   :  { %3107 = vst [vmem:[#allocation13_spill] sm:$0xff] %v2606_v25  ;;  %v410_v32 = vand.u32 2147483647, %v2606_v25  ;;  %v480_v56 = vmul.f32 %v2606_v25, %v2606_v25  ;;  %v137_v7 = vsel %vm122_vm0, %v136_v20, 0.0 }
 0x21d   :  { %439 = vadd.xlane.f32.xlu2 %v410_v32  ;;  %v495_v12 = vadd.f32 %v494_v63, %v480_v56  ;;  %v131_v32 = vadd.f32 %v130_v31, %v129_v28 }
 0x21f   :  { %v132_v33 = vrot.slane %v131_v32, 1 }
 0x220   :  { %v391_v47 = vpop.f32.mrf.mxu3 }
 0x221   :  { %v2624_v5 = vadd.f32 %v391_v47, %v327_v40  ;;  %v133_v37 = vadd.f32 %v132_v33, %v131_v32 }
 0x223   :  { %3108 = vst [vmem:[#allocation14_spill] sm:$0xff] %v2624_v5  ;;  %v411_v54 = vand.u32 2147483647, %v2624_v5  ;;  %v481_v62 = vmul.f32 %v2624_v5, %v2624_v5 }
 0x224   :  { %2204 = vpush %v133_v37 }
 0x225   :  { %441 = vadd.xlane.f32.xlu1 %v411_v54  ;;  %v496_v15 = vadd.f32 %v495_v12, %v481_v62 }
 0x228   :  { %v394_v4 = vpop.f32.mrf.mxu3  ;;  %v414_v39 = vpop.xlane.xlu1 %413 }
 0x229   :  { %v2638_v10 = vadd.f32 %v394_v4, %v330_v61 }
 0x22b   :  { %3109 = vst [vmem:[#allocation15_spill] sm:$0xff] %v2638_v10  ;;  %v412_v13 = vand.u32 2147483647, %v2638_v10  ;;  %v482_v8 = vmul.f32 %v2638_v10, %v2638_v10 }
 0x22d   :  { %443 = vadd.xlane.f32.xlu2 %v412_v13  ;;  %v497_v18 = vadd.f32 %v496_v15, %v482_v8 }
 0x22f   :  { %498 = vadd.xlane.f32.xlu1 %v497_v18 }
 0x230   :  { %v416_v42 = vpop.xlane.xlu1 %415 }
 0x235   :  { %138 = vadd.xlane.f32.xlu2 %v137_v7 }
 0x238   :  { %v418_v40 = vpop.xlane.xlu2 %417 }
 0x240   :  { %v420_v45 = vpop.xlane.xlu2 %419 }
 0x248   :  { %v422_v47 = vpop.xlane.xlu1 %421 }
 0x249   :  { %v445_v4 = vmax.f32 %v414_v39, %v422_v47 }
 0x250   :  { %v424_v48 = vpop.xlane.xlu2 %423 }
 0x251   :  { %v446_v63 = vmax.f32 %v416_v42, %v424_v48 }
 0x255   :  { %s2205_s2 = spop %2204 }
 0x256   :  { %s135_s28 = smul.f32 0.5, %s2205_s2 }
 0x258   :  { %v426_v51 = vpop.xlane.xlu1 %425 }
 0x259   :  { %v447_v12 = vmax.f32 %v418_v40, %v426_v51 }
 0x260   :  { %v428_v44 = vpop.xlane.xlu2 %427 }
 0x261   :  { %v448_v13 = vmax.f32 %v420_v45, %v428_v44 }
 0x268   :  { %v430_v58 = vpop.xlane.xlu1 %429 }
 0x269   :  { %v449_v15 = vmax.f32 %v445_v4, %v430_v58 }
 0x270   :  { %v432_v53 = vpop.xlane.xlu2 %431 }
 0x271   :  { %v450_v8 = vmax.f32 %v446_v63, %v432_v53 }
 0x278   :  { %v434_v54 = vpop.xlane.xlu1 %433 }
 0x279   :  { %v451_v18 = vmax.f32 %v447_v12, %v434_v54 }
 0x280   :  { %v436_v55 = vpop.xlane.xlu2 %435 }
 0x281   :  { %v452_v20 = vmax.f32 %v448_v13, %v436_v55 }
 0x288   :  { %v438_v56 = vpop.xlane.xlu1 %437 }
 0x289   :  { %v453_v24 = vmax.f32 %v449_v15, %v438_v56 }
 0x290   :  { %v440_v61 = vpop.xlane.xlu2 %439 }
 0x291   :  { %v454_v7 = vmax.f32 %v450_v8, %v440_v61 }
 0x293   :  { %v457_v33 = vmax.f32 %v453_v24, %v454_v7 }
 0x298   :  { %v442_v62 = vpop.xlane.xlu1 %441 }
 0x299   :  { %v455_v28 = vmax.f32 %v451_v18, %v442_v62 }
 0x2a0   :  { %v444_v22 = vpop.xlane.xlu2 %443 }
 0x2a1   :  { %v456_v31 = vmax.f32 %v452_v20, %v444_v22 }
 0x2a2   :  { %v499_v32 = vpop.xlane.xlu1 %498 }
 0x2a3   :  { %v458_v37 = vmax.f32 %v455_v28, %v456_v31  ;;  %v500_v6 = vrot.slane %v499_v32, 4 }
 0x2a5   :  { %v459_v10 = vmax.f32 %v457_v33, %v458_v37  ;;  %v501_v5 = vadd.f32 %v500_v6, %v499_v32 }
 0x2a7   :  { %v460_v25 = vrot.slane %v459_v10, 4  ;;  %v502_v39 = vrot.slane %v501_v5, 2 }
 0x2a8   :  { %v139_v42 = vpop.xlane.xlu2 %138 }
 0x2a9   :  { %v140_v40 = vrot.slane %v139_v42, 4  ;;  %v461_v45 = vmax.f32 %v459_v10, %v460_v25  ;;  %v503_v58 = vadd.f32 %v502_v39, %v501_v5 }
 0x2ab   :  { %v141_v47 = vadd.f32 %v140_v40, %v139_v42  ;;  %v462_v48 = vrot.slane %v461_v45, 2  ;;  %v504_v56 = vrot.slane %v503_v58, 1 }
 0x2ad   :  { %v142_v51 = vrot.slane %v141_v47, 2  ;;  %v463_v44 = vmax.f32 %v461_v45, %v462_v48  ;;  %v505_v63 = vadd.f32 %v504_v56, %v503_v58 }
 0x2af   :  { %v143_v53 = vadd.f32 %v142_v51, %v141_v47  ;;  %v464_v54 = vrot.slane %v463_v44, 1 }
 0x2b1   :  { %v144_v55 = vrot.slane %v143_v53, 1  ;;  %v465_v62 = vmax.f32 %v463_v44, %v464_v54  ;;  %v3112_v44 = vld [vmem:[#allocation15_spill] sm:$0xff] }
 0x2b3   :  { %v145_v61 = vadd.f32 %v144_v55, %v143_v53 }
 0x2b5   :  { %2206 = vpush %v145_v61 }
 0x2b6   :  { %2208 = vpush %v465_v62 }
 0x2b7   :  { %2210 = vpush %v505_v63 }
 0x2e6   :  { %s2207_s29 = spop %2206 }
 0x2e7   :  { %s147_s30 = smul.f32 0.5, %s2207_s29  ;;  %s2209_s6 = spop %2208 }
 0x2e8   :  { %s2211_s7 = spop %2210 }
 0x2e9   :  { %s148_s8 = sadd.f32 %s147_s30, %s135_s28  ;;  %v507_v6 = vstv %s2211_s7 }
 0x2ea   :  { %2257 = vrsqrt.f32 %v507_v6  ;;  %vm515_vm3 = vcmp.eq.f32.partialorder %v507_v6, inf  ;;  %v518_v18 = vand.u32 2147483648, %v507_v6  ;;  %vm517_vm4 = vcmp.eq.f32.partialorder %v507_v6, 0.0 }
 0x2eb   :  { %v149_v25 = vstv %s148_s8 }
 0x2ec   :  { %151 = vst.msk [vmem:[#allocation7] sm:$0x1] %vm150_vm2, %v149_v25 }
 0x2f0   :  { %v2258_v5 = vpop.eup %2257 }
 0x2f1   :  { %v509_v10 = vmul.f32 %v2258_v5, %v507_v6 }
 0x2f3   :  { %v510_v4 = vmul.f32 %v2258_v5, %v509_v10 }
 0x2f5   :  { %v511_v12 = vmul.f32 0.5, %v510_v4 }
 0x2f7   :  { %v512_v13 = vsub.f32 1.5, %v511_v12 }
 0x2f9   :  { %v513_v8 = vmul.f32 %v2258_v5, %v512_v13 }
 0x2fb   :  { %v514_v15 = vmul.f32 %v513_v8, %v507_v6 }
 0x2fd   :  { %v516_v20 = vsel %vm515_vm3, %v507_v6, %v514_v15 }
 0x2fe   :  { %v519_v7 = vsel %vm517_vm4, %v518_v18, %v516_v20 }
 0x2ff   :  { %2212 = vpush %v519_v7 }
 0x330   :  { %s2213_s9 = spop %2212 }
 0x331   :  { %s521_s10 = smin.f32 %s2213_s9, %s2209_s6  ;;  %s2361_s9 = smov [#allocation7]  }
 0x332   :  { %v522_v22 = vstv %s521_s10  ;;  %s2135_s10 = sshll.u32 %s2361_s9, 4  ;;  %s2136_s10 = int_to_ptr.vmem [resolvable:$true] %s2135_s10 }
 0x333   :  { %v523_v24 = vmul.f32 %v522_v22, %v2464_v9  ;;  %v524_v28 = vmul.f32 %v522_v22, %v2473_v16  ;;  %v525_v31 = vmul.f32 %v522_v22, %v2482_v23  ;;  %v526_v32 = vmul.f32 %v522_v22, %v2491_v30 }
 0x334   :  { %v527_v33 = vmul.f32 %v522_v22, %v2500_v36  ;;  %v528_v37 = vmul.f32 %v522_v22, %v2509_v43  ;;  %v529_v42 = vmul.f32 %v522_v22, %v2518_v52  ;;  %v530_v39 = vmul.f32 %v522_v22, %v2527_v60 }
 0x335   :  { %v531_v40 = vmul.f32 %v522_v22, %v2536_v11  ;;  %v532_v45 = vmul.f32 %v522_v22, %v2545_v19  ;;  %v533_v9 = vmul.f32 %v522_v22, %v2554_v29  ;;  %v534_v16 = vmul.f32 %v522_v22, %v2564_v38 }
 0x336   :  { %v2659_v23 = vsub.f32 %v523_v24, %v2469_v14  ;;  %v2662_v30 = vsub.f32 %v524_v28, %v2478_v21  ;;  %v2665_v36 = vsub.f32 %v525_v31, %v2487_v27  ;;  %v535_v43 = vmul.f32 %v522_v22, %v2574_v46 }
 0x337   :  { %v2669_v52 = vsub.f32 %v526_v32, %v2496_v34  ;;  %v2672_v60 = vsub.f32 %v527_v33, %v2505_v41  ;;  %v2675_v11 = vsub.f32 %v528_v37, %v2514_v50  ;;  %v536_v14 = vmul.f32 %v522_v22, %v2594_v1 }
 0x338   :  { %v537_v19 = vmul.f32 %v522_v22, %v2612_v0  ;;  %v2680_v21 = vsub.f32 %v529_v42, %v2523_v57  ;;  %v2683_v27 = vsub.f32 %v530_v39, %v2532_v3  ;;  %v538_v29 = vmul.f32 %v522_v22, %v2630_v2 }
 0x339   :  { %v2687_v34 = vsub.f32 %v531_v40, %v2541_v17  ;;  %v2690_v41 = vsub.f32 %v532_v45, %v2550_v26  ;;  %v2693_v50 = vsub.f32 %v533_v9, %v2560_v35  ;;  %v2696_v38 = vsub.f32 %v534_v16, %v2570_v49  ;;  %v3110_v35 = vld [vmem:[#allocation13_spill] sm:$0xff]  ;;  %v3111_v49 = vld [vmem:[#allocation14_spill] sm:$0xff] }
 0x33a   :  { %v555_v57 = vand.u32 2147483647, %v2659_v23  ;;  %v556_v46 = vand.u32 2147483647, %v2662_v30  ;;  %v557_v3 = vand.u32 2147483647, %v2665_v36  ;;  %v2702_v1 = vsub.f32 %v535_v43, %v2588_v59 }
 0x33b   :  { %v558_v17 = vand.u32 2147483647, %v2669_v52  ;;  %v559_v26 = vand.u32 2147483647, %v2672_v60  ;;  %v560_v0 = vand.u32 2147483647, %v2675_v11  ;;  %v2708_v2 = vsub.f32 %v536_v14, %v3110_v35 }
 0x33c   :  { %v2711_v47 = vsub.f32 %v537_v19, %v3111_v49  ;;  %v561_v48 = vand.u32 2147483647, %v2680_v21  ;;  %v562_v51 = vand.u32 2147483647, %v2683_v27  ;;  %v2716_v58 = vsub.f32 %v538_v29, %v3112_v44 }
 0x33d   :  { %v563_v59 = vand.u32 2147483647, %v2687_v34  ;;  %v571_v53 = vmax.f32 %v555_v57, %v559_v26  ;;  %v564_v54 = vand.u32 2147483647, %v2690_v41  ;;  %v565_v55 = vand.u32 2147483647, %v2693_v50 }
 0x33e   :  { %v566_v56 = vand.u32 2147483647, %v2696_v38  ;;  %v572_v61 = vmax.f32 %v556_v46, %v560_v0  ;;  %v567_v62 = vand.u32 2147483647, %v2702_v1  ;;  %v573_v63 = vmax.f32 %v557_v3, %v561_v48 }
 0x33f   :  { %v574_v6 = vmax.f32 %v558_v17, %v562_v51  ;;  %v575_v25 = vmax.f32 %v571_v53, %v563_v59  ;;  %v568_v5 = vand.u32 2147483647, %v2708_v2  ;;  %v569_v10 = vand.u32 2147483647, %v2711_v47 }
 0x340   :  { %v576_v4 = vmax.f32 %v572_v61, %v564_v54  ;;  %v570_v12 = vand.u32 2147483647, %v2716_v58  ;;  %v577_v13 = vmax.f32 %v573_v63, %v565_v55 }
 0x341   :  { %v578_v8 = vmax.f32 %v574_v6, %v566_v56  ;;  %v579_v15 = vmax.f32 %v575_v25, %v567_v62 }
 0x342   :  { %v580_v18 = vmax.f32 %v576_v4, %v568_v5  ;;  %v581_v20 = vmax.f32 %v577_v13, %v569_v10 }
 0x343   :  { %v582_v7 = vmax.f32 %v578_v8, %v570_v12 }
 0x344   :  { %v583_v22 = vmax.f32 %v579_v15, %v580_v18 }
 0x345   :  { %v584_v24 = vmax.f32 %v581_v20, %v582_v7 }
 0x347   :  { %v585_v28 = vmax.f32 %v583_v22, %v584_v24 }
 0x349   :  { %586 = vmax.xlane.f32.xlu2 %v585_v28 }
 0x3bc   :  { %v587_v31 = vpop.xlane.xlu2 %586 }
 0x3bd   :  { %v588_v32 = vrot.slane %v587_v31, 4 }
 0x3bf   :  { %v589_v33 = vmax.f32 %v587_v31, %v588_v32 }
 0x3c1   :  { %v590_v37 = vrot.slane %v589_v33, 2 }
 0x3c3   :  { %v591_v42 = vmax.f32 %v589_v33, %v590_v37 }
 0x3c5   :  { %v592_v39 = vrot.slane %v591_v42, 1 }
 0x3c7   :  { %v593_v40 = vmax.f32 %v591_v42, %v592_v39 }
 0x3c9   :  { %2214 = vpush %v593_v40 }
 0x3fa   :  { %s2215_s11 = spop %2214 }
 0x3fb   :  { %s595_s13 = smax.f32 %s2360_s12, %s2215_s11 }
 0x3fc   :  { %v596_v45 = vstv %s595_s13  ;;  %s2137_s13 = sshll.u32 %s3101_s5, 4  ;;  %s2138_s13 = int_to_ptr.hbm [resolvable:$true] %s2137_s13 }
 0x3fd   :  { %2259 = vrcp.f32 %v596_v45  ;;  %v608_v14 = vand.u32 2147483648, %v596_v45  ;;  %v606_v29 = vand.u32 2147483647, %v596_v45  ;;  %vm602_vm6 = vweird.f32 %v596_v45  ;;  %2140 = dma.vmem_to_hbm [thread:$0]  %s2136_s10, 16, %s2138_s13, [#allocation8]  }
 0x3ff   :  { %v609_v46 = vor.u32 1.1754944e-38, %v608_v14  ;;  %vm607_vm8 = vcmp.eq.f32.partialorder %v606_v29, 8.507059e+37 }
 0x403   :  { %v2260_v9 = vpop.eup %2259 }
 0x404   :  { %v598_v16 = vmul.f32 %v2260_v9, %v596_v45  ;;  %vm603_vm5 = vweird.f32 %v2260_v9 }
 0x405   :  { %vm604_vm7 = vmor %vm602_vm6, %vm603_vm5 }
 0x406   :  { %v599_v43 = vsub.f32 1.0, %v598_v16 }
 0x408   :  { %v600_v19 = vmul.f32 %v2260_v9, %v599_v43 }
 0x40a   :  { %v601_v57 = vadd.f32 %v2260_v9, %v600_v19 }
 0x40c   :  { %v605_v3 = vsel %vm604_vm7, %v2260_v9, %v601_v57 }
 0x40d   :  { %v610_v17 = vsel %vm607_vm8, %v609_v46, %v605_v3 }
 0x40e   :  { %2216 = vpush %v610_v17 }
 0x43f   :  { %s2217_s14 = spop %2216 }
 0x440   :  { %v612_v26 = vstv %s2217_s14 }
 0x441   :  { %v628_v0 = vmul.f32 %v612_v26, %v2716_v58  ;;  %v627_v35 = vmul.f32 %v612_v26, %v2711_v47  ;;  %v626_v49 = vmul.f32 %v612_v26, %v2708_v2  ;;  %v625_v48 = vmul.f32 %v612_v26, %v2702_v1 }
 0x442   :  { %v624_v51 = vmul.f32 %v612_v26, %v2696_v38  ;;  %v623_v44 = vmul.f32 %v612_v26, %v2693_v50  ;;  %v622_v59 = vmul.f32 %v612_v26, %v2690_v41  ;;  %v621_v53 = vmul.f32 %v612_v26, %v2687_v34 }
 0x443   :  { %629 = vmatpush.msrb.mxu0 %v628_v0  ;;  %v620_v54 = vmul.f32 %v612_v26, %v2683_v27  ;;  %v619_v55 = vmul.f32 %v612_v26, %v2680_v21  ;;  %v618_v56 = vmul.f32 %v612_v26, %v2675_v11  ;;  %v617_v61 = vmul.f32 %v612_v26, %v2672_v60 }
 0x444   :  { %v616_v62 = vmul.f32 %v612_v26, %v2669_v52  ;;  %v615_v63 = vmul.f32 %v612_v26, %v2665_v36  ;;  %v614_v6 = vmul.f32 %v612_v26, %v2662_v30  ;;  %v613_v25 = vmul.f32 %v612_v26, %v2659_v23 }
 0x445   :  { %630 = vmatpush.msrb.mxu0 %v627_v35 }
 0x447   :  { %631 = vmatpush.msrb.mxu0 %v626_v49 }
 0x449   :  { %632 = vmatpush.msrb.mxu0 %v625_v48 }
 0x44b   :  { %633 = vmatpush.msrb.mxu0 %v624_v51 }
 0x44d   :  { %634 = vmatpush.msrb.mxu0 %v623_v44 }
 0x44f   :  { %635 = vmatpush.msrb.mxu0 %v622_v59 }
 0x451   :  { %636 = vmatpush.msrb.mxu0 %v621_v53 }
 0x453   :  { %637 = vmatpush.msrb.mxu0 %v620_v54 }
 0x455   :  { %638 = vmatpush.msrb.mxu0 %v619_v55 }
 0x457   :  { %639 = vmatpush.msrb.mxu0 %v618_v56 }
 0x459   :  { %640 = vmatpush.msrb.mxu0 %v617_v61 }
 0x45b   :  { %641 = vmatpush.msrb.mxu0 %v616_v62 }
 0x45d   :  { %642 = vmatpush.msrb.mxu0 %v615_v63 }
 0x45f   :  { %643 = vmatpush.msrb.mxu0 %v614_v6 }
 0x461   :  { %644 = vmatpush.msrb.mxu0 %v613_v25 }
 0x462   :  { %645 = vmatmul.f32.vlgmr.msrb.gmra.mxu0 %v613_v25 }
 0x46a   :  { %648 = vmatmul.f32.gmra.mxu0 %v614_v6 }
 0x472   :  { %651 = vmatmul.f32.gmra.mxu0 %v615_v63 }
 0x47a   :  { %654 = vmatmul.f32.gmra.mxu0 %v616_v62 }
 0x482   :  { %657 = vmatmul.f32.gmra.mxu0 %v617_v61 }
 0x48a   :  { %660 = vmatmul.f32.gmra.mxu0 %v618_v56 }
 0x492   :  { %663 = vmatmul.f32.gmra.mxu0 %v619_v55 }
 0x49a   :  { %666 = vmatmul.f32.gmra.mxu0 %v620_v54 }
 0x4a2   :  { %669 = vmatmul.f32.gmra.mxu0 %v621_v53 }
 0x4aa   :  { %672 = vmatmul.f32.gmra.mxu0 %v622_v59 }
 0x4b2   :  { %675 = vmatmul.f32.gmra.mxu0 %v623_v44 }
 0x4ba   :  { %678 = vmatmul.f32.gmra.mxu0 %v624_v51 }
 0x4c2   :  { %681 = vmatmul.f32.gmra.mxu0 %v625_v48 }
 0x4ca   :  { %684 = vmatmul.f32.gmra.mxu0 %v626_v49 }
 0x4d2   :  { %687 = vmatmul.f32.gmra.mxu0 %v627_v35 }
 0x4da   :  { %690 = vmatmul.f32.gmra.mxu0 %v628_v0 }
 0x4df   :  { %v646_v5 = vpop.f32.mrf.mxu0 }
 0x4e7   :  { %v649_v10 = vpop.f32.mrf.mxu0 }
 0x4ef   :  { %v652_v4 = vpop.f32.mrf.mxu0 }
 0x4f7   :  { %v655_v12 = vpop.f32.mrf.mxu0 }
 0x4ff   :  { %v658_v13 = vpop.f32.mrf.mxu0 }
 0x507   :  { %v661_v8 = vpop.f32.mrf.mxu0 }
 0x50f   :  { %v664_v15 = vpop.f32.mrf.mxu0 }
 0x517   :  { %v667_v18 = vpop.f32.mrf.mxu0 }
 0x51f   :  { %v670_v20 = vpop.f32.mrf.mxu0 }
 0x527   :  { %v673_v7 = vpop.f32.mrf.mxu0 }
 0x52f   :  { %v676_v22 = vpop.f32.mrf.mxu0 }
 0x537   :  { %v679_v24 = vpop.f32.mrf.mxu0 }
 0x53f   :  { %v682_v28 = vpop.f32.mrf.mxu0 }
 0x547   :  { %v685_v31 = vpop.f32.mrf.mxu0 }
 0x54f   :  { %v688_v32 = vpop.f32.mrf.mxu0 }
 0x557   :  { %v691_v33 = vpop.f32.mrf.mxu0 }
 0x558   :  { %694 = vmatpush.msrb.mxu1 %v691_v33 }
 0x55a   :  { %695 = vmatpush.msrb.mxu1 %v688_v32 }
 0x55c   :  { %696 = vmatpush.msrb.mxu1 %v685_v31 }
 0x55e   :  { %697 = vmatpush.msrb.mxu1 %v682_v28 }
 0x560   :  { %698 = vmatpush.msrb.mxu1 %v679_v24 }
 0x562   :  { %699 = vmatpush.msrb.mxu1 %v676_v22 }
 0x564   :  { %700 = vmatpush.msrb.mxu1 %v673_v7 }
 0x566   :  { %701 = vmatpush.msrb.mxu1 %v670_v20 }
 0x568   :  { %702 = vmatpush.msrb.mxu1 %v667_v18 }
 0x56a   :  { %703 = vmatpush.msrb.mxu1 %v664_v15 }
 0x56c   :  { %704 = vmatpush.msrb.mxu1 %v661_v8 }
 0x56e   :  { %705 = vmatpush.msrb.mxu1 %v658_v13 }
 0x570   :  { %706 = vmatpush.msrb.mxu1 %v655_v12 }
 0x572   :  { %707 = vmatpush.msrb.mxu1 %v652_v4 }
 0x574   :  { %708 = vmatpush.msrb.mxu1 %v649_v10 }
 0x576   :  { %709 = vmatpush.msrb.mxu1 %v646_v5 }
 0x577   :  { %710 = vmatmul.f32.vlgmr.msrb.gmra.mxu1 %v646_v5 }
 0x57f   :  { %713 = vmatmul.f32.gmra.mxu1 %v649_v10 }
 0x587   :  { %716 = vmatmul.f32.gmra.mxu1 %v652_v4 }
 0x58f   :  { %719 = vmatmul.f32.gmra.mxu1 %v655_v12 }
 0x597   :  { %722 = vmatmul.f32.gmra.mxu1 %v658_v13 }
 0x59f   :  { %725 = vmatmul.f32.gmra.mxu1 %v661_v8 }
 0x5a7   :  { %728 = vmatmul.f32.gmra.mxu1 %v664_v15 }
 0x5af   :  { %731 = vmatmul.f32.gmra.mxu1 %v667_v18 }
 0x5b7   :  { %734 = vmatmul.f32.gmra.mxu1 %v670_v20 }
 0x5bf   :  { %737 = vmatmul.f32.gmra.mxu1 %v673_v7 }
 0x5c7   :  { %740 = vmatmul.f32.gmra.mxu1 %v676_v22 }
 0x5cf   :  { %743 = vmatmul.f32.gmra.mxu1 %v679_v24 }
 0x5d7   :  { %746 = vmatmul.f32.gmra.mxu1 %v682_v28 }
 0x5df   :  { %749 = vmatmul.f32.gmra.mxu1 %v685_v31 }
 0x5e7   :  { %752 = vmatmul.f32.gmra.mxu1 %v688_v32 }
 0x5ef   :  { %755 = vmatmul.f32.gmra.mxu1 %v691_v33 }
 0x5f4   :  { %v711_v37 = vpop.f32.mrf.mxu1 }
 0x5fc   :  { %v714_v42 = vpop.f32.mrf.mxu1 }
 0x604   :  { %v717_v39 = vpop.f32.mrf.mxu1 }
 0x60c   :  { %v720_v40 = vpop.f32.mrf.mxu1 }
 0x614   :  { %v723_v45 = vpop.f32.mrf.mxu1 }
 0x61c   :  { %v726_v9 = vpop.f32.mrf.mxu1 }
 0x624   :  { %v729_v16 = vpop.f32.mrf.mxu1 }
 0x62c   :  { %v732_v43 = vpop.f32.mrf.mxu1 }
 0x634   :  { %v735_v14 = vpop.f32.mrf.mxu1 }
 0x63c   :  { %v738_v19 = vpop.f32.mrf.mxu1 }
 0x644   :  { %v741_v29 = vpop.f32.mrf.mxu1 }
 0x64c   :  { %v744_v57 = vpop.f32.mrf.mxu1 }
 0x654   :  { %v747_v46 = vpop.f32.mrf.mxu1 }
 0x65c   :  { %v750_v3 = vpop.f32.mrf.mxu1 }
 0x664   :  { %v753_v17 = vpop.f32.mrf.mxu1 }
 0x66c   :  { %v756_v26 = vpop.f32.mrf.mxu1 }
 0x66d   :  { %759 = vmatpush.msrb.mxu2 %v756_v26 }
 0x66f   :  { %760 = vmatpush.msrb.mxu2 %v753_v17 }
 0x671   :  { %761 = vmatpush.msrb.mxu2 %v750_v3 }
 0x673   :  { %762 = vmatpush.msrb.mxu2 %v747_v46 }
 0x675   :  { %763 = vmatpush.msrb.mxu2 %v744_v57 }
 0x677   :  { %764 = vmatpush.msrb.mxu2 %v741_v29 }
 0x679   :  { %765 = vmatpush.msrb.mxu2 %v738_v19 }
 0x67b   :  { %766 = vmatpush.msrb.mxu2 %v735_v14 }
 0x67d   :  { %767 = vmatpush.msrb.mxu2 %v732_v43 }
 0x67f   :  { %768 = vmatpush.msrb.mxu2 %v729_v16 }
 0x681   :  { %769 = vmatpush.msrb.mxu2 %v726_v9 }
 0x683   :  { %770 = vmatpush.msrb.mxu2 %v723_v45 }
 0x685   :  { %771 = vmatpush.msrb.mxu2 %v720_v40 }
 0x687   :  { %772 = vmatpush.msrb.mxu2 %v717_v39 }
 0x689   :  { %773 = vmatpush.msrb.mxu2 %v714_v42 }
 0x68b   :  { %774 = vmatpush.msrb.mxu2 %v711_v37 }
 0x68c   :  { %775 = vmatmul.f32.vlgmr.msrb.gmra.mxu2 %v711_v37 }
 0x694   :  { %778 = vmatmul.f32.gmra.mxu2 %v714_v42 }
 0x69c   :  { %781 = vmatmul.f32.gmra.mxu2 %v717_v39 }
 0x6a4   :  { %784 = vmatmul.f32.gmra.mxu2 %v720_v40 }
 0x6ac   :  { %787 = vmatmul.f32.gmra.mxu2 %v723_v45 }
 0x6b4   :  { %790 = vmatmul.f32.gmra.mxu2 %v726_v9 }
 0x6bc   :  { %793 = vmatmul.f32.gmra.mxu2 %v729_v16 }
 0x6c4   :  { %796 = vmatmul.f32.gmra.mxu2 %v732_v43 }
 0x6cc   :  { %799 = vmatmul.f32.gmra.mxu2 %v735_v14 }
 0x6d4   :  { %802 = vmatmul.f32.gmra.mxu2 %v738_v19 }
 0x6dc   :  { %805 = vmatmul.f32.gmra.mxu2 %v741_v29 }
 0x6e4   :  { %808 = vmatmul.f32.gmra.mxu2 %v744_v57 }
 0x6ec   :  { %811 = vmatmul.f32.gmra.mxu2 %v747_v46 }
 0x6f4   :  { %814 = vmatmul.f32.gmra.mxu2 %v750_v3 }
 0x6fc   :  { %817 = vmatmul.f32.gmra.mxu2 %v753_v17 }
 0x704   :  { %820 = vmatmul.f32.gmra.mxu2 %v756_v26 }
 0x70f   :  { %v2743_v0 = vpop.f32.mrf.mxu2 }
 0x710   :  { %v824_v5 = vand.u32 2147483647, %v2743_v0 }
 0x717   :  { %v2745_v35 = vpop.f32.mrf.mxu2 }
 0x718   :  { %v825_v12 = vand.u32 2147483647, %v2745_v35 }
 0x71f   :  { %v2747_v49 = vpop.f32.mrf.mxu2 }
 0x720   :  { %v826_v15 = vand.u32 2147483647, %v2747_v49 }
 0x727   :  { %v2749_v48 = vpop.f32.mrf.mxu2 }
 0x728   :  { %v827_v18 = vand.u32 2147483647, %v2749_v48 }
 0x72f   :  { %v2751_v51 = vpop.f32.mrf.mxu2 }
 0x730   :  { %v828_v10 = vand.u32 2147483647, %v2751_v51 }
 0x732   :  { %v840_v31 = vmax.f32 %v824_v5, %v828_v10 }
 0x737   :  { %v2753_v44 = vpop.f32.mrf.mxu2 }
 0x738   :  { %v829_v25 = vand.u32 2147483647, %v2753_v44 }
 0x73a   :  { %v841_v7 = vmax.f32 %v825_v12, %v829_v25 }
 0x73f   :  { %v2755_v59 = vpop.f32.mrf.mxu2 }
 0x740   :  { %v830_v4 = vand.u32 2147483647, %v2755_v59 }
 0x742   :  { %v842_v32 = vmax.f32 %v826_v15, %v830_v4 }
 0x747   :  { %v2757_v53 = vpop.f32.mrf.mxu2 }
 0x748   :  { %v831_v13 = vand.u32 2147483647, %v2757_v53 }
 0x74a   :  { %v843_v33 = vmax.f32 %v827_v18, %v831_v13 }
 0x74f   :  { %v2759_v54 = vpop.f32.mrf.mxu2 }
 0x750   :  { %v832_v20 = vand.u32 2147483647, %v2759_v54 }
 0x752   :  { %v844_v40 = vmax.f32 %v840_v31, %v832_v20 }
 0x757   :  { %v2761_v55 = vpop.f32.mrf.mxu2 }
 0x758   :  { %v833_v8 = vand.u32 2147483647, %v2761_v55 }
 0x75a   :  { %v845_v37 = vmax.f32 %v841_v7, %v833_v8 }
 0x75f   :  { %v2763_v56 = vpop.f32.mrf.mxu2 }
 0x760   :  { %v834_v22 = vand.u32 2147483647, %v2763_v56 }
 0x762   :  { %v846_v9 = vmax.f32 %v842_v32, %v834_v22 }
 0x767   :  { %v2765_v61 = vpop.f32.mrf.mxu2 }
 0x768   :  { %v835_v24 = vand.u32 2147483647, %v2765_v61 }
 0x76a   :  { %v847_v16 = vmax.f32 %v843_v33, %v835_v24 }
 0x76f   :  { %v2767_v62 = vpop.f32.mrf.mxu2 }
 0x770   :  { %v836_v42 = vand.u32 2147483647, %v2767_v62 }
 0x772   :  { %v848_v19 = vmax.f32 %v844_v40, %v836_v42 }
 0x777   :  { %v2769_v63 = vpop.f32.mrf.mxu2 }
 0x778   :  { %v837_v28 = vand.u32 2147483647, %v2769_v63 }
 0x77a   :  { %v849_v14 = vmax.f32 %v845_v37, %v837_v28 }
 0x77c   :  { %v852_v46 = vmax.f32 %v848_v19, %v849_v14 }
 0x77f   :  { %v2771_v6 = vpop.f32.mrf.mxu2 }
 0x780   :  { %v838_v39 = vand.u32 2147483647, %v2771_v6 }
 0x782   :  { %v850_v29 = vmax.f32 %v846_v9, %v838_v39 }
 0x787   :  { %v821_v45 = vpop.f32.mrf.mxu2 }
 0x788   :  { %v839_v43 = vand.u32 2147483647, %v821_v45 }
 0x78a   :  { %v851_v57 = vmax.f32 %v847_v16, %v839_v43 }
 0x78c   :  { %v853_v3 = vmax.f32 %v850_v29, %v851_v57 }
 0x78e   :  { %v854_v17 = vmax.f32 %v852_v46, %v853_v3 }
 0x790   :  { %855 = vmax.xlane.f32.xlu1 %v854_v17 }
 0x803   :  { %v856_v26 = vpop.xlane.xlu1 %855 }
 0x804   :  { %v857_v25 = vrot.slane %v856_v26, 4 }
 0x806   :  { %v858_v5 = vmax.f32 %v856_v26, %v857_v25 }
 0x808   :  { %v859_v10 = vrot.slane %v858_v5, 2 }
 0x80a   :  { %v860_v4 = vmax.f32 %v858_v5, %v859_v10 }
 0x80c   :  { %v861_v12 = vrot.slane %v860_v4, 1 }
 0x80e   :  { %v862_v13 = vmax.f32 %v860_v4, %v861_v12 }
 0x810   :  { %2218 = vpush %v862_v13 }
 0x841   :  { %s2219_s15 = spop %2218 }
 0x842   :  { %s864_s16 = smax.f32 %s2360_s12, %s2219_s15 }
 0x843   :  { %v865_v8 = vstv %s864_s16 }
 0x844   :  { %2261 = vrcp.f32 %v865_v8  ;;  %v877_v7 = vand.u32 2147483648, %v865_v8  ;;  %v875_v24 = vand.u32 2147483647, %v865_v8  ;;  %vm871_vm10 = vweird.f32 %v865_v8 }
 0x846   :  { %v878_v31 = vor.u32 1.1754944e-38, %v877_v7  ;;  %vm876_vm12 = vcmp.eq.f32.partialorder %v875_v24, 8.507059e+37 }
 0x84a   :  { %v2262_v15 = vpop.eup %2261 }
 0x84b   :  { %v867_v18 = vmul.f32 %v2262_v15, %v865_v8  ;;  %vm872_vm9 = vweird.f32 %v2262_v15 }
 0x84c   :  { %vm873_vm11 = vmor %vm871_vm10, %vm872_vm9 }
 0x84d   :  { %v868_v20 = vsub.f32 1.0, %v867_v18 }
 0x84f   :  { %v869_v22 = vmul.f32 %v2262_v15, %v868_v20 }
 0x851   :  { %v870_v28 = vadd.f32 %v2262_v15, %v869_v22 }
 0x853   :  { %v874_v32 = vsel %vm873_vm11, %v2262_v15, %v870_v28 }
 0x854   :  { %v879_v33 = vsel %vm876_vm12, %v878_v31, %v874_v32 }
 0x855   :  { %2220 = vpush %v879_v33 }
 0x886   :  { %s2221_s17 = spop %2220 }
 0x887   :  { %v881_v37 = vstv %s2221_s17 }
 0x888   :  { %v897_v42 = vmul.f32 %v881_v37, %v821_v45  ;;  %v896_v39 = vmul.f32 %v881_v37, %v2771_v6  ;;  %v895_v40 = vmul.f32 %v881_v37, %v2769_v63  ;;  %v894_v9 = vmul.f32 %v881_v37, %v2767_v62 }
 0x889   :  { %v893_v16 = vmul.f32 %v881_v37, %v2765_v61  ;;  %v892_v43 = vmul.f32 %v881_v37, %v2763_v56  ;;  %v891_v14 = vmul.f32 %v881_v37, %v2761_v55  ;;  %v890_v45 = vmul.f32 %v881_v37, %v2759_v54 }
 0x88a   :  { %898 = vmatpush.msra.mxu3 %v897_v42  ;;  %v889_v6 = vmul.f32 %v881_v37, %v2757_v53  ;;  %v888_v63 = vmul.f32 %v881_v37, %v2755_v59  ;;  %v887_v62 = vmul.f32 %v881_v37, %v2753_v44  ;;  %v886_v61 = vmul.f32 %v881_v37, %v2751_v51 }
 0x88b   :  { %v885_v56 = vmul.f32 %v881_v37, %v2749_v48  ;;  %v884_v55 = vmul.f32 %v881_v37, %v2747_v49  ;;  %v883_v54 = vmul.f32 %v881_v37, %v2745_v35  ;;  %v882_v53 = vmul.f32 %v881_v37, %v2743_v0 }
 0x88c   :  { %899 = vmatpush.msra.mxu3 %v896_v39 }
 0x88e   :  { %900 = vmatpush.msra.mxu3 %v895_v40 }
 0x890   :  { %901 = vmatpush.msra.mxu3 %v894_v9 }
 0x892   :  { %902 = vmatpush.msra.mxu3 %v893_v16 }
 0x894   :  { %903 = vmatpush.msra.mxu3 %v892_v43 }
 0x896   :  { %904 = vmatpush.msra.mxu3 %v891_v14 }
 0x898   :  { %905 = vmatpush.msra.mxu3 %v890_v45 }
 0x89a   :  { %906 = vmatpush.msra.mxu3 %v889_v6 }
 0x89c   :  { %907 = vmatpush.msra.mxu3 %v888_v63 }
 0x89e   :  { %908 = vmatpush.msra.mxu3 %v887_v62 }
 0x8a0   :  { %909 = vmatpush.msra.mxu3 %v886_v61 }
 0x8a2   :  { %910 = vmatpush.msra.mxu3 %v885_v56 }
 0x8a4   :  { %911 = vmatpush.msra.mxu3 %v884_v55 }
 0x8a6   :  { %912 = vmatpush.msra.mxu3 %v883_v54 }
 0x8a8   :  { %913 = vmatpush.msra.mxu3 %v882_v53 }
 0x8a9   :  { %914 = vmatmul.f32.vlgmr.msra.gmra.mxu3 %v882_v53 }
 0x8b1   :  { %917 = vmatmul.f32.gmra.mxu3 %v883_v54 }
 0x8b9   :  { %920 = vmatmul.f32.gmra.mxu3 %v884_v55 }
 0x8c1   :  { %923 = vmatmul.f32.gmra.mxu3 %v885_v56 }
 0x8c9   :  { %926 = vmatmul.f32.gmra.mxu3 %v886_v61 }
 0x8d1   :  { %929 = vmatmul.f32.gmra.mxu3 %v887_v62 }
 0x8d9   :  { %932 = vmatmul.f32.gmra.mxu3 %v888_v63 }
 0x8e1   :  { %935 = vmatmul.f32.gmra.mxu3 %v889_v6 }
 0x8e9   :  { %938 = vmatmul.f32.gmra.mxu3 %v890_v45 }
 0x8f1   :  { %941 = vmatmul.f32.gmra.mxu3 %v891_v14 }
 0x8f9   :  { %944 = vmatmul.f32.gmra.mxu3 %v892_v43 }
 0x901   :  { %947 = vmatmul.f32.gmra.mxu3 %v893_v16 }
 0x909   :  { %950 = vmatmul.f32.gmra.mxu3 %v894_v9 }
 0x911   :  { %953 = vmatmul.f32.gmra.mxu3 %v895_v40 }
 0x919   :  { %956 = vmatmul.f32.gmra.mxu3 %v896_v39 }
 0x921   :  { %959 = vmatmul.f32.gmra.mxu3 %v897_v42 }
 0x92c   :  { %v915_v35 = vpop.f32.mrf.mxu3 }
 0x934   :  { %v918_v49 = vpop.f32.mrf.mxu3 }
 0x93c   :  { %v921_v0 = vpop.f32.mrf.mxu3 }
 0x944   :  { %v924_v48 = vpop.f32.mrf.mxu3 }
 0x94c   :  { %v927_v51 = vpop.f32.mrf.mxu3 }
 0x954   :  { %v930_v44 = vpop.f32.mrf.mxu3 }
 0x95c   :  { %v933_v59 = vpop.f32.mrf.mxu3 }
 0x964   :  { %v936_v19 = vpop.f32.mrf.mxu3 }
 0x96c   :  { %v939_v29 = vpop.f32.mrf.mxu3 }
 0x974   :  { %v942_v57 = vpop.f32.mrf.mxu3 }
 0x97c   :  { %v945_v46 = vpop.f32.mrf.mxu3 }
 0x984   :  { %v948_v3 = vpop.f32.mrf.mxu3 }
 0x98c   :  { %v951_v17 = vpop.f32.mrf.mxu3 }
 0x994   :  { %v954_v26 = vpop.f32.mrf.mxu3 }
 0x99c   :  { %v957_v25 = vpop.f32.mrf.mxu3 }
 0x9a4   :  { %v960_v5 = vpop.f32.mrf.mxu3 }
 0x9a5   :  { %963 = vmatpush.msra.mxu0 %v960_v5 }
 0x9a7   :  { %964 = vmatpush.msra.mxu0 %v957_v25 }
 0x9a9   :  { %965 = vmatpush.msra.mxu0 %v954_v26 }
 0x9ab   :  { %966 = vmatpush.msra.mxu0 %v951_v17 }
 0x9ad   :  { %967 = vmatpush.msra.mxu0 %v948_v3 }
 0x9af   :  { %968 = vmatpush.msra.mxu0 %v945_v46 }
 0x9b1   :  { %969 = vmatpush.msra.mxu0 %v942_v57 }
 0x9b3   :  { %970 = vmatpush.msra.mxu0 %v939_v29 }
 0x9b5   :  { %971 = vmatpush.msra.mxu0 %v936_v19 }
 0x9b7   :  { %972 = vmatpush.msra.mxu0 %v933_v59 }
 0x9b9   :  { %973 = vmatpush.msra.mxu0 %v930_v44 }
 0x9bb   :  { %974 = vmatpush.msra.mxu0 %v927_v51 }
 0x9bd   :  { %975 = vmatpush.msra.mxu0 %v924_v48 }
 0x9bf   :  { %976 = vmatpush.msra.mxu0 %v921_v0 }
 0x9c1   :  { %977 = vmatpush.msra.mxu0 %v918_v49 }
 0x9c3   :  { %978 = vmatpush.msra.mxu0 %v915_v35 }
 0x9c4   :  { %979 = vmatmul.f32.vlgmr.msra.gmra.mxu0 %v915_v35 }
 0x9cc   :  { %982 = vmatmul.f32.gmra.mxu0 %v918_v49 }
 0x9d4   :  { %985 = vmatmul.f32.gmra.mxu0 %v921_v0 }
 0x9dc   :  { %988 = vmatmul.f32.gmra.mxu0 %v924_v48 }
 0x9e4   :  { %991 = vmatmul.f32.gmra.mxu0 %v927_v51 }
 0x9ec   :  { %994 = vmatmul.f32.gmra.mxu0 %v930_v44 }
 0x9f4   :  { %997 = vmatmul.f32.gmra.mxu0 %v933_v59 }
 0x9fc   :  { %1000 = vmatmul.f32.gmra.mxu0 %v936_v19 }
 0xa04   :  { %1003 = vmatmul.f32.gmra.mxu0 %v939_v29 }
 0xa0c   :  { %1006 = vmatmul.f32.gmra.mxu0 %v942_v57 }
 0xa14   :  { %1009 = vmatmul.f32.gmra.mxu0 %v945_v46 }
 0xa1c   :  { %1012 = vmatmul.f32.gmra.mxu0 %v948_v3 }
 0xa24   :  { %1015 = vmatmul.f32.gmra.mxu0 %v951_v17 }
 0xa2c   :  { %1018 = vmatmul.f32.gmra.mxu0 %v954_v26 }
 0xa34   :  { %1021 = vmatmul.f32.gmra.mxu0 %v957_v25 }
 0xa3c   :  { %1024 = vmatmul.f32.gmra.mxu0 %v960_v5 }
 0xa41   :  { %v980_v10 = vpop.f32.mrf.mxu0 }
 0xa49   :  { %v983_v4 = vpop.f32.mrf.mxu0 }
 0xa51   :  { %v986_v12 = vpop.f32.mrf.mxu0 }
 0xa59   :  { %v989_v13 = vpop.f32.mrf.mxu0 }
 0xa61   :  { %v992_v8 = vpop.f32.mrf.mxu0 }
 0xa69   :  { %v995_v15 = vpop.f32.mrf.mxu0 }
 0xa71   :  { %v998_v18 = vpop.f32.mrf.mxu0 }
 0xa79   :  { %v1001_v20 = vpop.f32.mrf.mxu0 }
 0xa81   :  { %v1004_v7 = vpop.f32.mrf.mxu0 }
 0xa89   :  { %v1007_v22 = vpop.f32.mrf.mxu0 }
 0xa91   :  { %v1010_v24 = vpop.f32.mrf.mxu0 }
 0xa99   :  { %v1013_v28 = vpop.f32.mrf.mxu0 }
 0xaa1   :  { %v1016_v31 = vpop.f32.mrf.mxu0 }
 0xaa9   :  { %v1019_v32 = vpop.f32.mrf.mxu0 }
 0xab1   :  { %v1022_v33 = vpop.f32.mrf.mxu0 }
 0xab9   :  { %v1025_v37 = vpop.f32.mrf.mxu0 }
 0xaba   :  { %1028 = vmatpush.msra.mxu1 %v1025_v37 }
 0xabc   :  { %1029 = vmatpush.msra.mxu1 %v1022_v33 }
 0xabe   :  { %1030 = vmatpush.msra.mxu1 %v1019_v32 }
 0xac0   :  { %1031 = vmatpush.msra.mxu1 %v1016_v31 }
 0xac2   :  { %1032 = vmatpush.msra.mxu1 %v1013_v28 }
 0xac4   :  { %1033 = vmatpush.msra.mxu1 %v1010_v24 }
 0xac6   :  { %1034 = vmatpush.msra.mxu1 %v1007_v22 }
 0xac8   :  { %1035 = vmatpush.msra.mxu1 %v1004_v7 }
 0xaca   :  { %1036 = vmatpush.msra.mxu1 %v1001_v20 }
 0xacc   :  { %1037 = vmatpush.msra.mxu1 %v998_v18 }
 0xace   :  { %1038 = vmatpush.msra.mxu1 %v995_v15 }
 0xad0   :  { %1039 = vmatpush.msra.mxu1 %v992_v8 }
 0xad2   :  { %1040 = vmatpush.msra.mxu1 %v989_v13 }
 0xad4   :  { %1041 = vmatpush.msra.mxu1 %v986_v12 }
 0xad6   :  { %1042 = vmatpush.msra.mxu1 %v983_v4 }
 0xad8   :  { %1043 = vmatpush.msra.mxu1 %v980_v10 }
 0xad9   :  { %1044 = vmatmul.f32.vlgmr.msra.gmra.mxu1 %v980_v10 }
 0xae1   :  { %1047 = vmatmul.f32.gmra.mxu1 %v983_v4 }
 0xae9   :  { %1050 = vmatmul.f32.gmra.mxu1 %v986_v12 }
 0xaf1   :  { %1053 = vmatmul.f32.gmra.mxu1 %v989_v13 }
 0xaf9   :  { %1056 = vmatmul.f32.gmra.mxu1 %v992_v8 }
 0xb01   :  { %1059 = vmatmul.f32.gmra.mxu1 %v995_v15 }
 0xb09   :  { %1062 = vmatmul.f32.gmra.mxu1 %v998_v18 }
 0xb11   :  { %1065 = vmatmul.f32.gmra.mxu1 %v1001_v20 }
 0xb19   :  { %1068 = vmatmul.f32.gmra.mxu1 %v1004_v7 }
 0xb21   :  { %1071 = vmatmul.f32.gmra.mxu1 %v1007_v22 }
 0xb29   :  { %1074 = vmatmul.f32.gmra.mxu1 %v1010_v24 }
 0xb31   :  { %1077 = vmatmul.f32.gmra.mxu1 %v1013_v28 }
 0xb39   :  { %1080 = vmatmul.f32.gmra.mxu1 %v1016_v31 }
 0xb41   :  { %1083 = vmatmul.f32.gmra.mxu1 %v1019_v32 }
 0xb49   :  { %1086 = vmatmul.f32.gmra.mxu1 %v1022_v33 }
 0xb51   :  { %1089 = vmatmul.f32.gmra.mxu1 %v1025_v37 }
 0xb56   :  { %v2804_v42 = vpop.f32.mrf.mxu1 }
 0xb57   :  { %v1093_v35 = vand.u32 2147483647, %v2804_v42 }
 0xb5e   :  { %v2806_v39 = vpop.f32.mrf.mxu1 }
 0xb5f   :  { %v1094_v48 = vand.u32 2147483647, %v2806_v39 }
 0xb66   :  { %v2808_v40 = vpop.f32.mrf.mxu1 }
 0xb67   :  { %v1095_v59 = vand.u32 2147483647, %v2808_v40 }
 0xb6e   :  { %v2810_v9 = vpop.f32.mrf.mxu1 }
 0xb6f   :  { %v1096_v19 = vand.u32 2147483647, %v2810_v9 }
 0xb76   :  { %v2812_v16 = vpop.f32.mrf.mxu1 }
 0xb77   :  { %v1097_v49 = vand.u32 2147483647, %v2812_v16 }
 0xb79   :  { %v1109_v26 = vmax.f32 %v1093_v35, %v1097_v49 }
 0xb7e   :  { %v2814_v43 = vpop.f32.mrf.mxu1 }
 0xb7f   :  { %v1098_v53 = vand.u32 2147483647, %v2814_v43 }
 0xb81   :  { %v1110_v57 = vmax.f32 %v1094_v48, %v1098_v53 }
 0xb86   :  { %v2816_v14 = vpop.f32.mrf.mxu1 }
 0xb87   :  { %v1099_v0 = vand.u32 2147483647, %v2816_v14 }
 0xb89   :  { %v1111_v25 = vmax.f32 %v1095_v59, %v1099_v0 }
 0xb8e   :  { %v2818_v45 = vpop.f32.mrf.mxu1 }
 0xb8f   :  { %v1100_v51 = vand.u32 2147483647, %v2818_v45 }
 0xb91   :  { %v1112_v5 = vmax.f32 %v1096_v19, %v1100_v51 }
 0xb96   :  { %v2820_v6 = vpop.f32.mrf.mxu1 }
 0xb97   :  { %v1101_v29 = vand.u32 2147483647, %v2820_v6 }
 0xb99   :  { %v1113_v13 = vmax.f32 %v1109_v26, %v1101_v29 }
 0xb9e   :  { %v2822_v63 = vpop.f32.mrf.mxu1 }
 0xb9f   :  { %v1102_v44 = vand.u32 2147483647, %v2822_v63 }
 0xba1   :  { %v1114_v10 = vmax.f32 %v1110_v57, %v1102_v44 }
 0xba6   :  { %v2824_v62 = vpop.f32.mrf.mxu1 }
 0xba7   :  { %v1103_v46 = vand.u32 2147483647, %v2824_v62 }
 0xba9   :  { %v1115_v15 = vmax.f32 %v1111_v25, %v1103_v46 }
 0xbae   :  { %v2826_v61 = vpop.f32.mrf.mxu1 }
 0xbaf   :  { %v1104_v3 = vand.u32 2147483647, %v2826_v61 }
 0xbb1   :  { %v1116_v18 = vmax.f32 %v1112_v5, %v1104_v3 }
 0xbb6   :  { %v2828_v56 = vpop.f32.mrf.mxu1 }
 0xbb7   :  { %v1105_v4 = vand.u32 2147483647, %v2828_v56 }
 0xbb9   :  { %v1117_v22 = vmax.f32 %v1113_v13, %v1105_v4 }
 0xbbe   :  { %v2830_v55 = vpop.f32.mrf.mxu1 }
 0xbbf   :  { %v1106_v17 = vand.u32 2147483647, %v2830_v55 }
 0xbc1   :  { %v1118_v7 = vmax.f32 %v1114_v10, %v1106_v17 }
 0xbc3   :  { %v1121_v31 = vmax.f32 %v1117_v22, %v1118_v7 }
 0xbc6   :  { %v2832_v54 = vpop.f32.mrf.mxu1 }
 0xbc7   :  { %v1107_v12 = vand.u32 2147483647, %v2832_v54 }
 0xbc9   :  { %v1119_v24 = vmax.f32 %v1115_v15, %v1107_v12 }
 0xbce   :  { %v1090_v8 = vpop.f32.mrf.mxu1 }
 0xbcf   :  { %v1108_v20 = vand.u32 2147483647, %v1090_v8 }
 0xbd1   :  { %v1120_v28 = vmax.f32 %v1116_v18, %v1108_v20 }
 0xbd3   :  { %v1122_v32 = vmax.f32 %v1119_v24, %v1120_v28 }
 0xbd5   :  { %v1123_v33 = vmax.f32 %v1121_v31, %v1122_v32 }
 0xbd7   :  { %1124 = vmax.xlane.f32.xlu2 %v1123_v33 }
 0xc4a   :  { %v1125_v37 = vpop.xlane.xlu2 %1124 }
 0xc4b   :  { %v1126_v53 = vrot.slane %v1125_v37, 4 }
 0xc4d   :  { %v1127_v35 = vmax.f32 %v1125_v37, %v1126_v53 }
 0xc4f   :  { %v1128_v49 = vrot.slane %v1127_v35, 2 }
 0xc51   :  { %v1129_v0 = vmax.f32 %v1127_v35, %v1128_v49 }
 0xc53   :  { %v1130_v48 = vrot.slane %v1129_v0, 1 }
 0xc55   :  { %v1131_v51 = vmax.f32 %v1129_v0, %v1130_v48 }
 0xc57   :  { %2222 = vpush %v1131_v51 }
 0xc88   :  { %s2223_s18 = spop %2222 }
 0xc89   :  { %s1133_s19 = smax.f32 %s2360_s12, %s2223_s18  ;;  %s2362_s18 = smov [#allocation6]  }
 0xc8a   :  { %v1134_v44 = vstv %s1133_s19  ;;  %s2124_s19 = sshll.u32 %s2362_s18, 4  ;;  %s2125_s19 = int_to_ptr.vmem [resolvable:$true] %s2124_s19 }
 0xc8b   :  { %2263 = vrcp.f32 %v1134_v44  ;;  %v1146_v57 = vand.u32 2147483648, %v1134_v44  ;;  %v1144_v3 = vand.u32 2147483647, %v1134_v44  ;;  %vm1140_vm14 = vweird.f32 %v1134_v44 }
 0xc8d   :  { %v1147_v26 = vor.u32 1.1754944e-38, %v1146_v57  ;;  %vm1145_vm1 = vcmp.eq.f32.partialorder %v1144_v3, 8.507059e+37 }
 0xc91   :  { %v2264_v59 = vpop.eup %2263 }
 0xc92   :  { %v1136_v19 = vmul.f32 %v2264_v59, %v1134_v44  ;;  %vm1141_vm13 = vweird.f32 %v2264_v59 }
 0xc93   :  { %vm1142_vm15 = vmor %vm1140_vm14, %vm1141_vm13 }
 0xc94   :  { %v1137_v29 = vsub.f32 1.0, %v1136_v19 }
 0xc96   :  { %v1138_v46 = vmul.f32 %v2264_v59, %v1137_v29 }
 0xc98   :  { %v1139_v17 = vadd.f32 %v2264_v59, %v1138_v46 }
 0xc9a   :  { %v1143_v25 = vsel %vm1142_vm15, %v2264_v59, %v1139_v17 }
 0xc9b   :  { %v1148_v5 = vsel %vm1145_vm1, %v1147_v26, %v1143_v25 }
 0xc9c   :  { %2224 = vpush %v1148_v5 }
 0xccd   :  { %s2225_s20 = spop %2224 }
 0xcce   :  { %v1150_v10 = vstv %s2225_s20 }
 0xccf   :  { %v1166_v4 = vmul.f32 %v1150_v10, %v1090_v8  ;;  %v1165_v12 = vmul.f32 %v1150_v10, %v2832_v54  ;;  %v1164_v13 = vmul.f32 %v1150_v10, %v2830_v55  ;;  %v1163_v15 = vmul.f32 %v1150_v10, %v2828_v56 }
 0xcd0   :  { %v1162_v18 = vmul.f32 %v1150_v10, %v2826_v61  ;;  %v1161_v20 = vmul.f32 %v1150_v10, %v2824_v62  ;;  %v1160_v7 = vmul.f32 %v1150_v10, %v2822_v63  ;;  %v1159_v8 = vmul.f32 %v1150_v10, %v2820_v6 }
 0xcd1   :  { %1167 = vmatpush.msra.mxu2 %v1166_v4  ;;  %v1158_v54 = vmul.f32 %v1150_v10, %v2818_v45  ;;  %v1157_v55 = vmul.f32 %v1150_v10, %v2816_v14  ;;  %v1156_v56 = vmul.f32 %v1150_v10, %v2814_v43  ;;  %v1155_v61 = vmul.f32 %v1150_v10, %v2812_v16 }
 0xcd2   :  { %v1154_v62 = vmul.f32 %v1150_v10, %v2810_v9  ;;  %v1153_v63 = vmul.f32 %v1150_v10, %v2808_v40  ;;  %v1152_v6 = vmul.f32 %v1150_v10, %v2806_v39  ;;  %v1151_v45 = vmul.f32 %v1150_v10, %v2804_v42 }
 0xcd3   :  { %1168 = vmatpush.msra.mxu2 %v1165_v12 }
 0xcd5   :  { %1169 = vmatpush.msra.mxu2 %v1164_v13 }
 0xcd7   :  { %1170 = vmatpush.msra.mxu2 %v1163_v15 }
 0xcd9   :  { %1171 = vmatpush.msra.mxu2 %v1162_v18 }
 0xcdb   :  { %1172 = vmatpush.msra.mxu2 %v1161_v20 }
 0xcdd   :  { %1173 = vmatpush.msra.mxu2 %v1160_v7 }
 0xcdf   :  { %1174 = vmatpush.msra.mxu2 %v1159_v8 }
 0xce1   :  { %1175 = vmatpush.msra.mxu2 %v1158_v54 }
 0xce3   :  { %1176 = vmatpush.msra.mxu2 %v1157_v55 }
 0xce5   :  { %1177 = vmatpush.msra.mxu2 %v1156_v56 }
 0xce7   :  { %1178 = vmatpush.msra.mxu2 %v1155_v61 }
 0xce9   :  { %1179 = vmatpush.msra.mxu2 %v1154_v62 }
 0xceb   :  { %1180 = vmatpush.msra.mxu2 %v1153_v63 }
 0xced   :  { %1181 = vmatpush.msra.mxu2 %v1152_v6 }
 0xcef   :  { %1182 = vmatpush.msra.mxu2 %v1151_v45 }
 0xcf0   :  { %1183 = vmatmul.f32.vlgmr.msra.gmra.mxu2 %v1151_v45 }
 0xcf8   :  { %1186 = vmatmul.f32.gmra.mxu2 %v1152_v6 }
 0xd00   :  { %1189 = vmatmul.f32.gmra.mxu2 %v1153_v63 }
 0xd08   :  { %1192 = vmatmul.f32.gmra.mxu2 %v1154_v62 }
 0xd10   :  { %1195 = vmatmul.f32.gmra.mxu2 %v1155_v61 }
 0xd18   :  { %1198 = vmatmul.f32.gmra.mxu2 %v1156_v56 }
 0xd20   :  { %1201 = vmatmul.f32.gmra.mxu2 %v1157_v55 }
 0xd28   :  { %1204 = vmatmul.f32.gmra.mxu2 %v1158_v54 }
 0xd30   :  { %1207 = vmatmul.f32.gmra.mxu2 %v1159_v8 }
 0xd38   :  { %1210 = vmatmul.f32.gmra.mxu2 %v1160_v7 }
 0xd40   :  { %1213 = vmatmul.f32.gmra.mxu2 %v1161_v20 }
 0xd48   :  { %1216 = vmatmul.f32.gmra.mxu2 %v1162_v18 }
 0xd50   :  { %1219 = vmatmul.f32.gmra.mxu2 %v1163_v15 }
 0xd58   :  { %1222 = vmatmul.f32.gmra.mxu2 %v1164_v13 }
 0xd60   :  { %1225 = vmatmul.f32.gmra.mxu2 %v1165_v12 }
 0xd68   :  { %1228 = vmatmul.f32.gmra.mxu2 %v1166_v4 }
 0xd73   :  { %v1184_v39 = vpop.f32.mrf.mxu2 }
 0xd7b   :  { %v1187_v40 = vpop.f32.mrf.mxu2 }
 0xd83   :  { %v1190_v42 = vpop.f32.mrf.mxu2 }
 0xd8b   :  { %v1193_v9 = vpop.f32.mrf.mxu2 }
 0xd93   :  { %v1196_v16 = vpop.f32.mrf.mxu2 }
 0xd9b   :  { %v1199_v43 = vpop.f32.mrf.mxu2 }
 0xda3   :  { %v1202_v14 = vpop.f32.mrf.mxu2 }
 0xdab   :  { %v1205_v22 = vpop.f32.mrf.mxu2 }
 0xdb3   :  { %v1208_v24 = vpop.f32.mrf.mxu2 }
 0xdbb   :  { %v1211_v28 = vpop.f32.mrf.mxu2 }
 0xdc3   :  { %v1214_v31 = vpop.f32.mrf.mxu2 }
 0xdcb   :  { %v1217_v32 = vpop.f32.mrf.mxu2 }
 0xdd3   :  { %v1220_v33 = vpop.f32.mrf.mxu2 }
 0xddb   :  { %v1223_v37 = vpop.f32.mrf.mxu2 }
 0xde3   :  { %v1226_v53 = vpop.f32.mrf.mxu2 }
 0xdeb   :  { %v1229_v35 = vpop.f32.mrf.mxu2 }
 0xdec   :  { %1232 = vmatpush.msra.mxu3 %v1229_v35 }
 0xdee   :  { %1233 = vmatpush.msra.mxu3 %v1226_v53 }
 0xdf0   :  { %1234 = vmatpush.msra.mxu3 %v1223_v37 }
 0xdf2   :  { %1235 = vmatpush.msra.mxu3 %v1220_v33 }
 0xdf4   :  { %1236 = vmatpush.msra.mxu3 %v1217_v32 }
 0xdf6   :  { %1237 = vmatpush.msra.mxu3 %v1214_v31 }
 0xdf8   :  { %1238 = vmatpush.msra.mxu3 %v1211_v28 }
 0xdfa   :  { %1239 = vmatpush.msra.mxu3 %v1208_v24 }
 0xdfc   :  { %1240 = vmatpush.msra.mxu3 %v1205_v22 }
 0xdfe   :  { %1241 = vmatpush.msra.mxu3 %v1202_v14 }
 0xe00   :  { %1242 = vmatpush.msra.mxu3 %v1199_v43 }
 0xe02   :  { %1243 = vmatpush.msra.mxu3 %v1196_v16 }
 0xe04   :  { %1244 = vmatpush.msra.mxu3 %v1193_v9 }
 0xe06   :  { %1245 = vmatpush.msra.mxu3 %v1190_v42 }
 0xe08   :  { %1246 = vmatpush.msra.mxu3 %v1187_v40 }
 0xe0a   :  { %1247 = vmatpush.msra.mxu3 %v1184_v39 }
 0xe0b   :  { %1248 = vmatmul.f32.vlgmr.msra.gmra.mxu3 %v1184_v39 }
 0xe13   :  { %1251 = vmatmul.f32.gmra.mxu3 %v1187_v40 }
 0xe1b   :  { %1254 = vmatmul.f32.gmra.mxu3 %v1190_v42 }
 0xe23   :  { %1257 = vmatmul.f32.gmra.mxu3 %v1193_v9 }
 0xe2b   :  { %1260 = vmatmul.f32.gmra.mxu3 %v1196_v16 }
 0xe33   :  { %1263 = vmatmul.f32.gmra.mxu3 %v1199_v43 }
 0xe3b   :  { %1266 = vmatmul.f32.gmra.mxu3 %v1202_v14 }
 0xe43   :  { %1269 = vmatmul.f32.gmra.mxu3 %v1205_v22 }
 0xe4b   :  { %1272 = vmatmul.f32.gmra.mxu3 %v1208_v24 }
 0xe53   :  { %1275 = vmatmul.f32.gmra.mxu3 %v1211_v28 }
 0xe5b   :  { %1278 = vmatmul.f32.gmra.mxu3 %v1214_v31 }
 0xe63   :  { %1281 = vmatmul.f32.gmra.mxu3 %v1217_v32 }
 0xe6b   :  { %1284 = vmatmul.f32.gmra.mxu3 %v1220_v33 }
 0xe73   :  { %1287 = vmatmul.f32.gmra.mxu3 %v1223_v37 }
 0xe7b   :  { %1290 = vmatmul.f32.gmra.mxu3 %v1226_v53 }
 0xe83   :  { %1293 = vmatmul.f32.gmra.mxu3 %v1229_v35 }
 0xe8e   :  { %v1249_v49 = vpop.f32.mrf.mxu3 }
 0xe96   :  { %v1252_v0 = vpop.f32.mrf.mxu3 }
 0xe9e   :  { %v1255_v48 = vpop.f32.mrf.mxu3 }
 0xea6   :  { %v1258_v51 = vpop.f32.mrf.mxu3 }
 0xeae   :  { %v1261_v44 = vpop.f32.mrf.mxu3 }
 0xeb6   :  { %v1264_v59 = vpop.f32.mrf.mxu3 }
 0xebe   :  { %v1267_v19 = vpop.f32.mrf.mxu3 }
 0xec6   :  { %v1270_v29 = vpop.f32.mrf.mxu3 }
 0xece   :  { %v1273_v57 = vpop.f32.mrf.mxu3 }
 0xed6   :  { %v1276_v46 = vpop.f32.mrf.mxu3 }
 0xede   :  { %v1279_v3 = vpop.f32.mrf.mxu3 }
 0xee6   :  { %v1282_v17 = vpop.f32.mrf.mxu3 }
 0xeee   :  { %v1285_v26 = vpop.f32.mrf.mxu3 }
 0xef6   :  { %v1288_v25 = vpop.f32.mrf.mxu3 }
 0xefe   :  { %v1291_v5 = vpop.f32.mrf.mxu3 }
 0xf06   :  { %v1294_v10 = vpop.f32.mrf.mxu3 }
 0xf07   :  { %1297 = vmatpush.msrb.mxu0 %v1294_v10 }
 0xf09   :  { %1298 = vmatpush.msrb.mxu0 %v1291_v5 }
 0xf0b   :  { %1299 = vmatpush.msrb.mxu0 %v1288_v25 }
 0xf0d   :  { %1300 = vmatpush.msrb.mxu0 %v1285_v26 }
 0xf0f   :  { %1301 = vmatpush.msrb.mxu0 %v1282_v17 }
 0xf11   :  { %1302 = vmatpush.msrb.mxu0 %v1279_v3 }
 0xf13   :  { %1303 = vmatpush.msrb.mxu0 %v1276_v46 }
 0xf15   :  { %1304 = vmatpush.msrb.mxu0 %v1273_v57 }
 0xf17   :  { %1305 = vmatpush.msrb.mxu0 %v1270_v29 }
 0xf19   :  { %1306 = vmatpush.msrb.mxu0 %v1267_v19 }
 0xf1b   :  { %1307 = vmatpush.msrb.mxu0 %v1264_v59 }
 0xf1d   :  { %1308 = vmatpush.msrb.mxu0 %v1261_v44 }
 0xf1f   :  { %1309 = vmatpush.msrb.mxu0 %v1258_v51 }
 0xf21   :  { %1310 = vmatpush.msrb.mxu0 %v1255_v48 }
 0xf23   :  { %1311 = vmatpush.msrb.mxu0 %v1252_v0 }
 0xf25   :  { %1312 = vmatpush.msrb.mxu0 %v1249_v49 }
 0xf26   :  { %1313 = vmatmul.f32.vlgmr.msrb.gmra.mxu0 %v1249_v49 }
 0xf2e   :  { %1316 = vmatmul.f32.gmra.mxu0 %v1252_v0 }
 0xf36   :  { %1319 = vmatmul.f32.gmra.mxu0 %v1255_v48 }
 0xf3e   :  { %1322 = vmatmul.f32.gmra.mxu0 %v1258_v51 }
 0xf46   :  { %1325 = vmatmul.f32.gmra.mxu0 %v1261_v44 }
 0xf4e   :  { %1328 = vmatmul.f32.gmra.mxu0 %v1264_v59 }
 0xf56   :  { %1331 = vmatmul.f32.gmra.mxu0 %v1267_v19 }
 0xf5e   :  { %1334 = vmatmul.f32.gmra.mxu0 %v1270_v29 }
 0xf66   :  { %1337 = vmatmul.f32.gmra.mxu0 %v1273_v57 }
 0xf6e   :  { %1340 = vmatmul.f32.gmra.mxu0 %v1276_v46 }
 0xf76   :  { %1343 = vmatmul.f32.gmra.mxu0 %v1279_v3 }
 0xf7e   :  { %1346 = vmatmul.f32.gmra.mxu0 %v1282_v17 }
 0xf86   :  { %1349 = vmatmul.f32.gmra.mxu0 %v1285_v26 }
 0xf8e   :  { %1352 = vmatmul.f32.gmra.mxu0 %v1288_v25 }
 0xf96   :  { %1355 = vmatmul.f32.gmra.mxu0 %v1291_v5 }
 0xf9e   :  { %1358 = vmatmul.f32.gmra.mxu0 %v1294_v10 }
 0xfa3   :  { %v2865_v4 = vpop.f32.mrf.mxu0 }
 0xfa4   :  { %v1362_v39 = vand.u32 2147483647, %v2865_v4 }
 0xfab   :  { %v2867_v12 = vpop.f32.mrf.mxu0 }
 0xfac   :  { %v1363_v9 = vand.u32 2147483647, %v2867_v12 }
 0xfb3   :  { %v2869_v13 = vpop.f32.mrf.mxu0 }
 0xfb4   :  { %v1364_v14 = vand.u32 2147483647, %v2869_v13 }
 0xfbb   :  { %v2871_v15 = vpop.f32.mrf.mxu0 }
 0xfbc   :  { %v1365_v22 = vand.u32 2147483647, %v2871_v15 }
 0xfc3   :  { %v2873_v18 = vpop.f32.mrf.mxu0 }
 0xfc4   :  { %v1366_v40 = vand.u32 2147483647, %v2873_v18 }
 0xfc6   :  { %v1378_v37 = vmax.f32 %v1362_v39, %v1366_v40 }
 0xfcb   :  { %v2875_v20 = vpop.f32.mrf.mxu0 }
 0xfcc   :  { %v1367_v45 = vand.u32 2147483647, %v2875_v20 }
 0xfce   :  { %v1379_v28 = vmax.f32 %v1363_v9, %v1367_v45 }
 0xfd3   :  { %v2877_v7 = vpop.f32.mrf.mxu0 }
 0xfd4   :  { %v1368_v42 = vand.u32 2147483647, %v2877_v7 }
 0xfd6   :  { %v1380_v53 = vmax.f32 %v1364_v14, %v1368_v42 }
 0xfdb   :  { %v2879_v8 = vpop.f32.mrf.mxu0 }
 0xfdc   :  { %v1369_v16 = vand.u32 2147483647, %v2879_v8 }
 0xfde   :  { %v1381_v35 = vmax.f32 %v1365_v22, %v1369_v16 }
 0xfe3   :  { %v2881_v54 = vpop.f32.mrf.mxu0 }
 0xfe4   :  { %v1370_v24 = vand.u32 2147483647, %v2881_v54 }
 0xfe6   :  { %v1382_v51 = vmax.f32 %v1378_v37, %v1370_v24 }
 0xfeb   :  { %v2883_v55 = vpop.f32.mrf.mxu0 }
 0xfec   :  { %v1371_v43 = vand.u32 2147483647, %v2883_v55 }
 0xfee   :  { %v1383_v49 = vmax.f32 %v1379_v28, %v1371_v43 }
 0xff3   :  { %v2885_v56 = vpop.f32.mrf.mxu0 }
 0xff4   :  { %v1372_v31 = vand.u32 2147483647, %v2885_v56 }
 0xff6   :  { %v1384_v59 = vmax.f32 %v1380_v53, %v1372_v31 }
 0xffb   :  { %v2887_v61 = vpop.f32.mrf.mxu0 }
 0xffc   :  { %v1373_v32 = vand.u32 2147483647, %v2887_v61 }
 0xffe   :  { %v1385_v19 = vmax.f32 %v1381_v35, %v1373_v32 }
0x1003   :  { %v2889_v62 = vpop.f32.mrf.mxu0 }
0x1004   :  { %v1374_v0 = vand.u32 2147483647, %v2889_v62 }
0x1006   :  { %v1386_v46 = vmax.f32 %v1382_v51, %v1374_v0 }
0x100b   :  { %v2891_v63 = vpop.f32.mrf.mxu0 }
0x100c   :  { %v1375_v33 = vand.u32 2147483647, %v2891_v63 }
0x100e   :  { %v1387_v29 = vmax.f32 %v1383_v49, %v1375_v33 }
0x1010   :  { %v1390_v26 = vmax.f32 %v1386_v46, %v1387_v29 }
0x1013   :  { %v2893_v6 = vpop.f32.mrf.mxu0 }
0x1014   :  { %v1376_v48 = vand.u32 2147483647, %v2893_v6 }
0x1016   :  { %v1388_v3 = vmax.f32 %v1384_v59, %v1376_v48 }
0x101b   :  { %v1359_v44 = vpop.f32.mrf.mxu0 }
0x101c   :  { %v1377_v57 = vand.u32 2147483647, %v1359_v44 }
0x101e   :  { %v1389_v17 = vmax.f32 %v1385_v19, %v1377_v57 }
0x1020   :  { %v1391_v25 = vmax.f32 %v1388_v3, %v1389_v17 }
0x1022   :  { %v1392_v5 = vmax.f32 %v1390_v26, %v1391_v25 }
0x1024   :  { %1393 = vmax.xlane.f32.xlu1 %v1392_v5 }
0x1097   :  { %v1394_v10 = vpop.xlane.xlu1 %1393 }
0x1098   :  { %v1395_v45 = vrot.slane %v1394_v10, 4 }
0x109a   :  { %v1396_v39 = vmax.f32 %v1394_v10, %v1395_v45 }
0x109c   :  { %v1397_v40 = vrot.slane %v1396_v39, 2 }
0x109e   :  { %v1398_v42 = vmax.f32 %v1396_v39, %v1397_v40 }
0x10a0   :  { %v1399_v9 = vrot.slane %v1398_v42, 1 }
0x10a2   :  { %v1400_v16 = vmax.f32 %v1398_v42, %v1399_v9 }
0x10a4   :  { %2226 = vpush %v1400_v16 }
0x10d5   :  { %s2227_s21 = spop %2226 }
0x10d6   :  { %s1402_s22 = smax.f32 %s2360_s12, %s2227_s21 }
0x10d7   :  { %v1403_v43 = vstv %s1402_s22  ;;  %s2126_s22 = sshll.u32 %s3100_s4, 4  ;;  %s2127_s22 = int_to_ptr.hbm [resolvable:$true] %s2126_s22 }
0x10d8   :  { %2265 = vrcp.f32 %v1403_v43  ;;  %v1415_v28 = vand.u32 2147483648, %v1403_v43  ;;  %v1413_v32 = vand.u32 2147483647, %v1403_v43  ;;  %vm1409_vm3 = vweird.f32 %v1403_v43 }
0x10da   :  { %v1416_v37 = vor.u32 1.1754944e-38, %v1415_v28  ;;  %vm1414_vm5 = vcmp.eq.f32.partialorder %v1413_v32, 8.507059e+37 }
0x10de   :  { %v2266_v14 = vpop.eup %2265 }
0x10df   :  { %v1405_v22 = vmul.f32 %v2266_v14, %v1403_v43  ;;  %vm1410_vm2 = vweird.f32 %v2266_v14 }
0x10e0   :  { %vm1411_vm4 = vmor %vm1409_vm3, %vm1410_vm2 }
0x10e1   :  { %v1406_v24 = vsub.f32 1.0, %v1405_v22 }
0x10e3   :  { %v1407_v31 = vmul.f32 %v2266_v14, %v1406_v24 }
0x10e5   :  { %v1408_v33 = vadd.f32 %v2266_v14, %v1407_v31 }
0x10e7   :  { %v1412_v53 = vsel %vm1411_vm4, %v2266_v14, %v1408_v33 }
0x10e8   :  { %v1417_v35 = vsel %vm1414_vm5, %v1416_v37, %v1412_v53 }
0x10e9   :  { %2228 = vpush %v1417_v35 }
0x111a   :  { %s2229_s23 = spop %2228 }
0x111b   :  { %v1419_v49 = vstv %s2229_s23 }
0x111c   :  { %v1435_v0 = vmul.f32 %v1419_v49, %v1359_v44  ;;  %v1434_v48 = vmul.f32 %v1419_v49, %v2893_v6  ;;  %v1433_v51 = vmul.f32 %v1419_v49, %v2891_v63  ;;  %v1432_v59 = vmul.f32 %v1419_v49, %v2889_v62 }
0x111d   :  { %v1431_v19 = vmul.f32 %v1419_v49, %v2887_v61  ;;  %v1430_v29 = vmul.f32 %v1419_v49, %v2885_v56  ;;  %v1429_v57 = vmul.f32 %v1419_v49, %v2883_v55  ;;  %v1428_v44 = vmul.f32 %v1419_v49, %v2881_v54 }
0x111e   :  { %1436 = vmatpush.msrb.mxu1 %v1435_v0  ;;  %v1427_v6 = vmul.f32 %v1419_v49, %v2879_v8  ;;  %v1426_v63 = vmul.f32 %v1419_v49, %v2877_v7  ;;  %v1425_v62 = vmul.f32 %v1419_v49, %v2875_v20  ;;  %v1424_v61 = vmul.f32 %v1419_v49, %v2873_v18 }
0x111f   :  { %v1423_v56 = vmul.f32 %v1419_v49, %v2871_v15  ;;  %v1422_v55 = vmul.f32 %v1419_v49, %v2869_v13  ;;  %v1421_v54 = vmul.f32 %v1419_v49, %v2867_v12  ;;  %v1420_v8 = vmul.f32 %v1419_v49, %v2865_v4 }
0x1120   :  { %1437 = vmatpush.msrb.mxu1 %v1434_v48 }
0x1122   :  { %1438 = vmatpush.msrb.mxu1 %v1433_v51 }
0x1124   :  { %1439 = vmatpush.msrb.mxu1 %v1432_v59 }
0x1126   :  { %1440 = vmatpush.msrb.mxu1 %v1431_v19 }
0x1128   :  { %1441 = vmatpush.msrb.mxu1 %v1430_v29 }
0x112a   :  { %1442 = vmatpush.msrb.mxu1 %v1429_v57 }
0x112c   :  { %1443 = vmatpush.msrb.mxu1 %v1428_v44 }
0x112e   :  { %1444 = vmatpush.msrb.mxu1 %v1427_v6 }
0x1130   :  { %1445 = vmatpush.msrb.mxu1 %v1426_v63 }
0x1132   :  { %1446 = vmatpush.msrb.mxu1 %v1425_v62 }
0x1134   :  { %1447 = vmatpush.msrb.mxu1 %v1424_v61 }
0x1136   :  { %1448 = vmatpush.msrb.mxu1 %v1423_v56 }
0x1138   :  { %1449 = vmatpush.msrb.mxu1 %v1422_v55 }
0x113a   :  { %1450 = vmatpush.msrb.mxu1 %v1421_v54 }
0x113c   :  { %1451 = vmatpush.msrb.mxu1 %v1420_v8 }
0x113d   :  { %1452 = vmatmul.f32.vlgmr.msrb.gmra.mxu1 %v1420_v8 }
0x1145   :  { %1455 = vmatmul.f32.gmra.mxu1 %v1421_v54 }
0x114d   :  { %1458 = vmatmul.f32.gmra.mxu1 %v1422_v55 }
0x1155   :  { %1461 = vmatmul.f32.gmra.mxu1 %v1423_v56 }
0x115d   :  { %1464 = vmatmul.f32.gmra.mxu1 %v1424_v61 }
0x1165   :  { %1467 = vmatmul.f32.gmra.mxu1 %v1425_v62 }
0x116d   :  { %1470 = vmatmul.f32.gmra.mxu1 %v1426_v63 }
0x1175   :  { %1473 = vmatmul.f32.gmra.mxu1 %v1427_v6 }
0x117d   :  { %1476 = vmatmul.f32.gmra.mxu1 %v1428_v44 }
0x1185   :  { %1479 = vmatmul.f32.gmra.mxu1 %v1429_v57 }
0x118d   :  { %1482 = vmatmul.f32.gmra.mxu1 %v1430_v29 }
0x1195   :  { %1485 = vmatmul.f32.gmra.mxu1 %v1431_v19 }
0x119d   :  { %1488 = vmatmul.f32.gmra.mxu1 %v1432_v59 }
0x11a5   :  { %1491 = vmatmul.f32.gmra.mxu1 %v1433_v51 }
0x11ad   :  { %1494 = vmatmul.f32.gmra.mxu1 %v1434_v48 }
0x11b5   :  { %1497 = vmatmul.f32.gmra.mxu1 %v1435_v0 }
0x11ba   :  { %v1453_v12 = vpop.f32.mrf.mxu1 }
0x11c2   :  { %v1456_v13 = vpop.f32.mrf.mxu1 }
0x11ca   :  { %v1459_v4 = vpop.f32.mrf.mxu1 }
0x11d2   :  { %v1462_v15 = vpop.f32.mrf.mxu1 }
0x11da   :  { %v1465_v18 = vpop.f32.mrf.mxu1 }
0x11e2   :  { %v1468_v20 = vpop.f32.mrf.mxu1 }
0x11ea   :  { %v1471_v7 = vpop.f32.mrf.mxu1 }
0x11f2   :  { %v1474_v46 = vpop.f32.mrf.mxu1 }
0x11fa   :  { %v1477_v3 = vpop.f32.mrf.mxu1 }
0x1202   :  { %v1480_v17 = vpop.f32.mrf.mxu1 }
0x120a   :  { %v1483_v26 = vpop.f32.mrf.mxu1 }
0x1212   :  { %v1486_v25 = vpop.f32.mrf.mxu1 }
0x121a   :  { %v1489_v5 = vpop.f32.mrf.mxu1 }
0x1222   :  { %v1492_v10 = vpop.f32.mrf.mxu1 }
0x122a   :  { %v1495_v45 = vpop.f32.mrf.mxu1 }
0x1232   :  { %v1498_v39 = vpop.f32.mrf.mxu1 }
0x1233   :  { %1501 = vmatpush.msrb.mxu2 %v1498_v39 }
0x1235   :  { %1502 = vmatpush.msrb.mxu2 %v1495_v45 }
0x1237   :  { %1503 = vmatpush.msrb.mxu2 %v1492_v10 }
0x1239   :  { %1504 = vmatpush.msrb.mxu2 %v1489_v5 }
0x123b   :  { %1505 = vmatpush.msrb.mxu2 %v1486_v25 }
0x123d   :  { %1506 = vmatpush.msrb.mxu2 %v1483_v26 }
0x123f   :  { %1507 = vmatpush.msrb.mxu2 %v1480_v17 }
0x1241   :  { %1508 = vmatpush.msrb.mxu2 %v1477_v3 }
0x1243   :  { %1509 = vmatpush.msrb.mxu2 %v1474_v46 }
0x1245   :  { %1510 = vmatpush.msrb.mxu2 %v1471_v7 }
0x1247   :  { %1511 = vmatpush.msrb.mxu2 %v1468_v20 }
0x1249   :  { %1512 = vmatpush.msrb.mxu2 %v1465_v18 }
0x124b   :  { %1513 = vmatpush.msrb.mxu2 %v1462_v15 }
0x124d   :  { %1514 = vmatpush.msrb.mxu2 %v1459_v4 }
0x124f   :  { %1515 = vmatpush.msrb.mxu2 %v1456_v13 }
0x1251   :  { %1516 = vmatpush.msrb.mxu2 %v1453_v12 }
0x1252   :  { %1517 = vmatmul.f32.vlgmr.msrb.gmra.mxu2 %v1453_v12 }
0x125a   :  { %1520 = vmatmul.f32.gmra.mxu2 %v1456_v13 }
0x1262   :  { %1523 = vmatmul.f32.gmra.mxu2 %v1459_v4 }
0x126a   :  { %1526 = vmatmul.f32.gmra.mxu2 %v1462_v15 }
0x1272   :  { %1529 = vmatmul.f32.gmra.mxu2 %v1465_v18 }
0x127a   :  { %1532 = vmatmul.f32.gmra.mxu2 %v1468_v20 }
0x1282   :  { %1535 = vmatmul.f32.gmra.mxu2 %v1471_v7 }
0x128a   :  { %1538 = vmatmul.f32.gmra.mxu2 %v1474_v46 }
0x1292   :  { %1541 = vmatmul.f32.gmra.mxu2 %v1477_v3 }
0x129a   :  { %1544 = vmatmul.f32.gmra.mxu2 %v1480_v17 }
0x12a2   :  { %1547 = vmatmul.f32.gmra.mxu2 %v1483_v26 }
0x12aa   :  { %1550 = vmatmul.f32.gmra.mxu2 %v1486_v25 }
0x12b2   :  { %1553 = vmatmul.f32.gmra.mxu2 %v1489_v5 }
0x12ba   :  { %1556 = vmatmul.f32.gmra.mxu2 %v1492_v10 }
0x12c2   :  { %1559 = vmatmul.f32.gmra.mxu2 %v1495_v45 }
0x12ca   :  { %1562 = vmatmul.f32.gmra.mxu2 %v1498_v39 }
0x12d5   :  { %v1518_v40 = vpop.f32.mrf.mxu2 }
0x12dd   :  { %v1521_v42 = vpop.f32.mrf.mxu2 }
0x12e5   :  { %v1524_v9 = vpop.f32.mrf.mxu2 }
0x12ed   :  { %v1527_v16 = vpop.f32.mrf.mxu2 }
0x12f5   :  { %v1530_v43 = vpop.f32.mrf.mxu2 }
0x12fd   :  { %v1533_v14 = vpop.f32.mrf.mxu2 }
0x1305   :  { %v1536_v22 = vpop.f32.mrf.mxu2 }
0x130d   :  { %v1539_v24 = vpop.f32.mrf.mxu2 }
0x1315   :  { %v1542_v28 = vpop.f32.mrf.mxu2 }
0x131d   :  { %v1545_v31 = vpop.f32.mrf.mxu2 }
0x1325   :  { %v1548_v32 = vpop.f32.mrf.mxu2 }
0x132d   :  { %v1551_v33 = vpop.f32.mrf.mxu2 }
0x1335   :  { %v1554_v37 = vpop.f32.mrf.mxu2 }
0x133d   :  { %v1557_v53 = vpop.f32.mrf.mxu2 }
0x1345   :  { %v1560_v35 = vpop.f32.mrf.mxu2 }
0x134d   :  { %v1563_v49 = vpop.f32.mrf.mxu2 }
0x134e   :  { %1566 = vmatpush.msra.mxu3 %v1563_v49 }
0x1350   :  { %1567 = vmatpush.msra.mxu3 %v1560_v35 }
0x1352   :  { %1568 = vmatpush.msra.mxu3 %v1557_v53 }
0x1354   :  { %1569 = vmatpush.msra.mxu3 %v1554_v37 }
0x1356   :  { %1570 = vmatpush.msra.mxu3 %v1551_v33 }
0x1358   :  { %1571 = vmatpush.msra.mxu3 %v1548_v32 }
0x135a   :  { %1572 = vmatpush.msra.mxu3 %v1545_v31 }
0x135c   :  { %1573 = vmatpush.msra.mxu3 %v1542_v28 }
0x135e   :  { %1574 = vmatpush.msra.mxu3 %v1539_v24 }
0x1360   :  { %1575 = vmatpush.msra.mxu3 %v1536_v22 }
0x1362   :  { %1576 = vmatpush.msra.mxu3 %v1533_v14 }
0x1364   :  { %1577 = vmatpush.msra.mxu3 %v1530_v43 }
0x1366   :  { %1578 = vmatpush.msra.mxu3 %v1527_v16 }
0x1368   :  { %1579 = vmatpush.msra.mxu3 %v1524_v9 }
0x136a   :  { %1580 = vmatpush.msra.mxu3 %v1521_v42 }
0x136c   :  { %1581 = vmatpush.msra.mxu3 %v1518_v40 }
0x136d   :  { %1582 = vmatmul.f32.vlgmr.msra.gmra.mxu3 %v1518_v40 }
0x136e   :  { %2023 = vmatpush.msra.mxu3 %v2716_v58 }
0x1370   :  { %2024 = vmatpush.msra.mxu3 %v2711_v47 }
0x1372   :  { %2025 = vmatpush.msra.mxu3 %v2708_v2 }
0x1374   :  { %2026 = vmatpush.msra.mxu3 %v2702_v1 }
0x1375   :  { %1585 = vmatmul.f32.gmra.mxu3 %v1521_v42 }
0x1376   :  { %2027 = vmatpush.msra.mxu3 %v2696_v38 }
0x1378   :  { %2028 = vmatpush.msra.mxu3 %v2693_v50 }
0x137a   :  { %2029 = vmatpush.msra.mxu3 %v2690_v41 }
0x137c   :  { %2030 = vmatpush.msra.mxu3 %v2687_v34 }
0x137d   :  { %1588 = vmatmul.f32.gmra.mxu3 %v1524_v9 }
0x137e   :  { %2031 = vmatpush.msra.mxu3 %v2683_v27 }
0x1380   :  { %2032 = vmatpush.msra.mxu3 %v2680_v21 }
0x1382   :  { %2033 = vmatpush.msra.mxu3 %v2675_v11 }
0x1384   :  { %2034 = vmatpush.msra.mxu3 %v2672_v60 }
0x1385   :  { %1591 = vmatmul.f32.gmra.mxu3 %v1527_v16 }
0x1386   :  { %2035 = vmatpush.msra.mxu3 %v2669_v52 }
0x1388   :  { %2036 = vmatpush.msra.mxu3 %v2665_v36 }
0x138a   :  { %2037 = vmatpush.msra.mxu3 %v2662_v30 }
0x138c   :  { %2038 = vmatpush.msra.mxu3 %v2659_v23 }
0x138d   :  { %1594 = vmatmul.f32.gmra.mxu3 %v1530_v43 }
0x1395   :  { %1597 = vmatmul.f32.gmra.mxu3 %v1533_v14 }
0x139d   :  { %1600 = vmatmul.f32.gmra.mxu3 %v1536_v22 }
0x13a5   :  { %1603 = vmatmul.f32.gmra.mxu3 %v1539_v24 }
0x13ad   :  { %1606 = vmatmul.f32.gmra.mxu3 %v1542_v28 }
0x13b5   :  { %1609 = vmatmul.f32.gmra.mxu3 %v1545_v31 }
0x13bd   :  { %1612 = vmatmul.f32.gmra.mxu3 %v1548_v32 }
0x13c5   :  { %1615 = vmatmul.f32.gmra.mxu3 %v1551_v33 }
0x13cd   :  { %1618 = vmatmul.f32.gmra.mxu3 %v1554_v37 }
0x13d5   :  { %1621 = vmatmul.f32.gmra.mxu3 %v1557_v53 }
0x13dd   :  { %1624 = vmatmul.f32.gmra.mxu3 %v1560_v35 }
0x13e5   :  { %1627 = vmatmul.f32.gmra.mxu3 %v1563_v49 }
0x13f0   :  { %v2942_v0 = vpop.f32.mrf.mxu3 }
0x13f1   :  { %v1631_v12 = vand.u32 2147483647, %v2942_v0 }
0x13f8   :  { %v2944_v48 = vpop.f32.mrf.mxu3 }
0x13f9   :  { %v1632_v15 = vand.u32 2147483647, %v2944_v48 }
0x1400   :  { %v2946_v51 = vpop.f32.mrf.mxu3 }
0x1401   :  { %v1633_v7 = vand.u32 2147483647, %v2946_v51 }
0x1408   :  { %v2948_v59 = vpop.f32.mrf.mxu3 }
0x1409   :  { %v1634_v46 = vand.u32 2147483647, %v2948_v59 }
0x1410   :  { %v2950_v19 = vpop.f32.mrf.mxu3 }
0x1411   :  { %v1635_v13 = vand.u32 2147483647, %v2950_v19 }
0x1413   :  { %v1647_v10 = vmax.f32 %v1631_v12, %v1635_v13 }
0x1418   :  { %v2952_v29 = vpop.f32.mrf.mxu3 }
0x1419   :  { %v1636_v8 = vand.u32 2147483647, %v2952_v29 }
0x141b   :  { %v1648_v17 = vmax.f32 %v1632_v15, %v1636_v8 }
0x1420   :  { %v2954_v57 = vpop.f32.mrf.mxu3 }
0x1421   :  { %v1637_v4 = vand.u32 2147483647, %v2954_v57 }
0x1423   :  { %v1649_v45 = vmax.f32 %v1633_v7, %v1637_v4 }
0x1428   :  { %v2956_v44 = vpop.f32.mrf.mxu3 }
0x1429   :  { %v1638_v18 = vand.u32 2147483647, %v2956_v44 }
0x142b   :  { %v1650_v39 = vmax.f32 %v1634_v46, %v1638_v18 }
0x1430   :  { %v2958_v6 = vpop.f32.mrf.mxu3 }
0x1431   :  { %v1639_v3 = vand.u32 2147483647, %v2958_v6 }
0x1433   :  { %v1651_v16 = vmax.f32 %v1647_v10, %v1639_v3 }
0x1438   :  { %v2960_v63 = vpop.f32.mrf.mxu3 }
0x1439   :  { %v1640_v20 = vand.u32 2147483647, %v2960_v63 }
0x143b   :  { %v1652_v40 = vmax.f32 %v1648_v17, %v1640_v20 }
0x1440   :  { %v2962_v62 = vpop.f32.mrf.mxu3 }
0x1441   :  { %v1641_v26 = vand.u32 2147483647, %v2962_v62 }
0x1443   :  { %v1653_v14 = vmax.f32 %v1649_v45, %v1641_v26 }
0x1448   :  { %v2964_v61 = vpop.f32.mrf.mxu3 }
0x1449   :  { %v1642_v25 = vand.u32 2147483647, %v2964_v61 }
0x144b   :  { %v1654_v22 = vmax.f32 %v1650_v39, %v1642_v25 }
0x1450   :  { %v2966_v56 = vpop.f32.mrf.mxu3 }
0x1451   :  { %v1643_v42 = vand.u32 2147483647, %v2966_v56 }
0x1453   :  { %v1655_v31 = vmax.f32 %v1651_v16, %v1643_v42 }
0x1458   :  { %v2968_v55 = vpop.f32.mrf.mxu3 }
0x1459   :  { %v1644_v5 = vand.u32 2147483647, %v2968_v55 }
0x145b   :  { %v1656_v24 = vmax.f32 %v1652_v40, %v1644_v5 }
0x145d   :  { %v1659_v37 = vmax.f32 %v1655_v31, %v1656_v24 }
0x1460   :  { %v2970_v54 = vpop.f32.mrf.mxu3 }
0x1461   :  { %v1645_v9 = vand.u32 2147483647, %v2970_v54 }
0x1463   :  { %v1657_v32 = vmax.f32 %v1653_v14, %v1645_v9 }
0x1468   :  { %v1628_v43 = vpop.f32.mrf.mxu3 }
0x1469   :  { %v1646_v28 = vand.u32 2147483647, %v1628_v43 }
0x146b   :  { %v1658_v33 = vmax.f32 %v1654_v22, %v1646_v28 }
0x146d   :  { %v1660_v53 = vmax.f32 %v1657_v32, %v1658_v33 }
0x146f   :  { %v1661_v35 = vmax.f32 %v1659_v37, %v1660_v53 }
0x1471   :  { %1662 = vmax.xlane.f32.xlu2 %v1661_v35 }
0x14e4   :  { %v1663_v49 = vpop.xlane.xlu2 %1662 }
0x14e5   :  { %v1664_v8 = vrot.slane %v1663_v49, 4 }
0x14e7   :  { %v1665_v12 = vmax.f32 %v1663_v49, %v1664_v8 }
0x14e9   :  { %v1666_v13 = vrot.slane %v1665_v12, 2 }
0x14eb   :  { %v1667_v4 = vmax.f32 %v1665_v12, %v1666_v13 }
0x14ed   :  { %v1668_v15 = vrot.slane %v1667_v4, 1 }
0x14ef   :  { %v1669_v18 = vmax.f32 %v1667_v4, %v1668_v15 }
0x14f1   :  { %2230 = vpush %v1669_v18 }
0x1522   :  { %s2231_s24 = spop %2230 }
0x1523   :  { %s1671_s0 = smax.f32 %s2360_s12, %s2231_s24 }
0x1524   :  { %v1672_v20 = vstv %s1671_s0 }
0x1525   :  { %2267 = vrcp.f32 %v1672_v20  ;;  %v1684_v17 = vand.u32 2147483648, %v1672_v20  ;;  %v1682_v25 = vand.u32 2147483647, %v1672_v20  ;;  %vm1678_vm7 = vweird.f32 %v1672_v20 }
0x1527   :  { %v1685_v10 = vor.u32 1.1754944e-38, %v1684_v17  ;;  %vm1683_vm9 = vcmp.eq.f32.partialorder %v1682_v25, 8.507059e+37 }
0x152b   :  { %v2268_v7 = vpop.eup %2267 }
0x152c   :  { %v1674_v46 = vmul.f32 %v2268_v7, %v1672_v20  ;;  %vm1679_vm6 = vweird.f32 %v2268_v7 }
0x152d   :  { %vm1680_vm8 = vmor %vm1678_vm7, %vm1679_vm6 }
0x152e   :  { %v1675_v3 = vsub.f32 1.0, %v1674_v46 }
0x1530   :  { %v1676_v26 = vmul.f32 %v2268_v7, %v1675_v3 }
0x1532   :  { %v1677_v5 = vadd.f32 %v2268_v7, %v1676_v26 }
0x1534   :  { %v1681_v45 = vsel %vm1680_vm8, %v2268_v7, %v1677_v5 }
0x1535   :  { %v1686_v39 = vsel %vm1683_vm9, %v1685_v10, %v1681_v45 }
0x1536   :  { %2232 = vpush %v1686_v39 }
0x1567   :  { %s2233_s25 = spop %2232 }
0x1568   :  { %v1688_v40 = vstv %s2233_s25 }
0x1569   :  { %v1704_v42 = vmul.f32 %v1688_v40, %v1628_v43  ;;  %v1703_v9 = vmul.f32 %v1688_v40, %v2970_v54  ;;  %v1702_v16 = vmul.f32 %v1688_v40, %v2968_v55  ;;  %v1701_v14 = vmul.f32 %v1688_v40, %v2966_v56 }
0x156a   :  { %v1700_v22 = vmul.f32 %v1688_v40, %v2964_v61  ;;  %v1699_v24 = vmul.f32 %v1688_v40, %v2962_v62  ;;  %v1698_v28 = vmul.f32 %v1688_v40, %v2960_v63  ;;  %v1697_v43 = vmul.f32 %v1688_v40, %v2958_v6 }
0x156b   :  { %1705 = vmatpush.msra.mxu0 %v1704_v42  ;;  %v1696_v54 = vmul.f32 %v1688_v40, %v2956_v44  ;;  %v1695_v55 = vmul.f32 %v1688_v40, %v2954_v57  ;;  %v1694_v56 = vmul.f32 %v1688_v40, %v2952_v29  ;;  %v1693_v61 = vmul.f32 %v1688_v40, %v2950_v19 }
0x156c   :  { %v1692_v62 = vmul.f32 %v1688_v40, %v2948_v59  ;;  %v1691_v63 = vmul.f32 %v1688_v40, %v2946_v51  ;;  %v1690_v6 = vmul.f32 %v1688_v40, %v2944_v48  ;;  %v1689_v44 = vmul.f32 %v1688_v40, %v2942_v0 }
0x156d   :  { %1706 = vmatpush.msra.mxu0 %v1703_v9 }
0x156f   :  { %1707 = vmatpush.msra.mxu0 %v1702_v16 }
0x1571   :  { %1708 = vmatpush.msra.mxu0 %v1701_v14 }
0x1573   :  { %1709 = vmatpush.msra.mxu0 %v1700_v22 }
0x1575   :  { %1710 = vmatpush.msra.mxu0 %v1699_v24 }
0x1577   :  { %1711 = vmatpush.msra.mxu0 %v1698_v28 }
0x1579   :  { %1712 = vmatpush.msra.mxu0 %v1697_v43 }
0x157b   :  { %1713 = vmatpush.msra.mxu0 %v1696_v54 }
0x157d   :  { %1714 = vmatpush.msra.mxu0 %v1695_v55 }
0x157f   :  { %1715 = vmatpush.msra.mxu0 %v1694_v56 }
0x1581   :  { %1716 = vmatpush.msra.mxu0 %v1693_v61 }
0x1583   :  { %1717 = vmatpush.msra.mxu0 %v1692_v62 }
0x1585   :  { %1718 = vmatpush.msra.mxu0 %v1691_v63 }
0x1587   :  { %1719 = vmatpush.msra.mxu0 %v1690_v6 }
0x1589   :  { %1720 = vmatpush.msra.mxu0 %v1689_v44 }
0x158a   :  { %1721 = vmatmul.f32.vlgmr.msra.gmra.mxu0 %v1689_v44 }
0x158b   :  { %2069 = vmatpush.msrb.mxu0 %v2716_v58 }
0x158d   :  { %2070 = vmatpush.msrb.mxu0 %v2711_v47 }
0x158f   :  { %2071 = vmatpush.msrb.mxu0 %v2708_v2 }
0x1591   :  { %2072 = vmatpush.msrb.mxu0 %v2702_v1 }
0x1592   :  { %1724 = vmatmul.f32.gmra.mxu0 %v1690_v6 }
0x1593   :  { %2073 = vmatpush.msrb.mxu0 %v2696_v38 }
0x1595   :  { %2074 = vmatpush.msrb.mxu0 %v2693_v50 }
0x1597   :  { %2075 = vmatpush.msrb.mxu0 %v2690_v41 }
0x1599   :  { %2076 = vmatpush.msrb.mxu0 %v2687_v34 }
0x159a   :  { %1727 = vmatmul.f32.gmra.mxu0 %v1691_v63 }
0x159b   :  { %2077 = vmatpush.msrb.mxu0 %v2683_v27 }
0x159d   :  { %2078 = vmatpush.msrb.mxu0 %v2680_v21 }
0x159f   :  { %2079 = vmatpush.msrb.mxu0 %v2675_v11 }
0x15a1   :  { %2080 = vmatpush.msrb.mxu0 %v2672_v60 }
0x15a2   :  { %1730 = vmatmul.f32.gmra.mxu0 %v1692_v62 }
0x15a3   :  { %2081 = vmatpush.msrb.mxu0 %v2669_v52 }
0x15a5   :  { %2082 = vmatpush.msrb.mxu0 %v2665_v36 }
0x15a7   :  { %2083 = vmatpush.msrb.mxu0 %v2662_v30 }
0x15a9   :  { %2084 = vmatpush.msrb.mxu0 %v2659_v23 }
0x15aa   :  { %1733 = vmatmul.f32.gmra.mxu0 %v1693_v61 }
0x15b2   :  { %1736 = vmatmul.f32.gmra.mxu0 %v1694_v56 }
0x15ba   :  { %1739 = vmatmul.f32.gmra.mxu0 %v1695_v55 }
0x15c2   :  { %1742 = vmatmul.f32.gmra.mxu0 %v1696_v54 }
0x15ca   :  { %1745 = vmatmul.f32.gmra.mxu0 %v1697_v43 }
0x15d2   :  { %1748 = vmatmul.f32.gmra.mxu0 %v1698_v28 }
0x15da   :  { %1751 = vmatmul.f32.gmra.mxu0 %v1699_v24 }
0x15e2   :  { %1754 = vmatmul.f32.gmra.mxu0 %v1700_v22 }
0x15ea   :  { %1757 = vmatmul.f32.gmra.mxu0 %v1701_v14 }
0x15f2   :  { %1760 = vmatmul.f32.gmra.mxu0 %v1702_v16 }
0x15fa   :  { %1763 = vmatmul.f32.gmra.mxu0 %v1703_v9 }
0x1602   :  { %1766 = vmatmul.f32.gmra.mxu0 %v1704_v42 }
0x1607   :  { %v1722_v60 = vpop.f32.mrf.mxu0 }
0x160f   :  { %v1725_v52 = vpop.f32.mrf.mxu0 }
0x1617   :  { %v1728_v11 = vpop.f32.mrf.mxu0 }
0x161f   :  { %v1731_v36 = vpop.f32.mrf.mxu0 }
0x1627   :  { %v1734_v21 = vpop.f32.mrf.mxu0 }
0x162f   :  { %v1737_v30 = vpop.f32.mrf.mxu0 }
0x1637   :  { %v1740_v27 = vpop.f32.mrf.mxu0 }
0x163f   :  { %v1743_v23 = vpop.f32.mrf.mxu0 }
0x1647   :  { %v1746_v34 = vpop.f32.mrf.mxu0 }
0x164f   :  { %v1749_v41 = vpop.f32.mrf.mxu0 }
0x1657   :  { %v1752_v50 = vpop.f32.mrf.mxu0 }
0x165f   :  { %v1755_v38 = vpop.f32.mrf.mxu0 }
0x1667   :  { %v1758_v1 = vpop.f32.mrf.mxu0 }
0x166f   :  { %v1761_v2 = vpop.f32.mrf.mxu0 }
0x1677   :  { %v1764_v47 = vpop.f32.mrf.mxu0 }
0x167f   :  { %v1767_v58 = vpop.f32.mrf.mxu0 }
0x1680   :  { %1770 = vmatpush.msra.mxu1 %v1767_v58 }
0x1682   :  { %1771 = vmatpush.msra.mxu1 %v1764_v47 }
0x1684   :  { %1772 = vmatpush.msra.mxu1 %v1761_v2 }
0x1686   :  { %1773 = vmatpush.msra.mxu1 %v1758_v1 }
0x1688   :  { %1774 = vmatpush.msra.mxu1 %v1755_v38 }
0x168a   :  { %1775 = vmatpush.msra.mxu1 %v1752_v50 }
0x168c   :  { %1776 = vmatpush.msra.mxu1 %v1749_v41 }
0x168e   :  { %1777 = vmatpush.msra.mxu1 %v1746_v34 }
0x1690   :  { %1778 = vmatpush.msra.mxu1 %v1743_v23 }
0x1692   :  { %1779 = vmatpush.msra.mxu1 %v1740_v27 }
0x1694   :  { %1780 = vmatpush.msra.mxu1 %v1737_v30 }
0x1696   :  { %1781 = vmatpush.msra.mxu1 %v1734_v21 }
0x1698   :  { %1782 = vmatpush.msra.mxu1 %v1731_v36 }
0x169a   :  { %1783 = vmatpush.msra.mxu1 %v1728_v11 }
0x169c   :  { %1784 = vmatpush.msra.mxu1 %v1725_v52 }
0x169e   :  { %1785 = vmatpush.msra.mxu1 %v1722_v60 }
0x169f   :  { %1786 = vmatmul.f32.vlgmr.msra.gmra.mxu1 %v1722_v60 }
0x16a7   :  { %1789 = vmatmul.f32.gmra.mxu1 %v1725_v52 }
0x16af   :  { %1792 = vmatmul.f32.gmra.mxu1 %v1728_v11 }
0x16b7   :  { %1795 = vmatmul.f32.gmra.mxu1 %v1731_v36 }
0x16bf   :  { %1798 = vmatmul.f32.gmra.mxu1 %v1734_v21 }
0x16c7   :  { %1801 = vmatmul.f32.gmra.mxu1 %v1737_v30 }
0x16cf   :  { %1804 = vmatmul.f32.gmra.mxu1 %v1740_v27 }
0x16d7   :  { %1807 = vmatmul.f32.gmra.mxu1 %v1743_v23 }
0x16df   :  { %1810 = vmatmul.f32.gmra.mxu1 %v1746_v34 }
0x16e7   :  { %1813 = vmatmul.f32.gmra.mxu1 %v1749_v41 }
0x16ef   :  { %1816 = vmatmul.f32.gmra.mxu1 %v1752_v50 }
0x16f7   :  { %1819 = vmatmul.f32.gmra.mxu1 %v1755_v38 }
0x16ff   :  { %1822 = vmatmul.f32.gmra.mxu1 %v1758_v1 }
0x1707   :  { %1825 = vmatmul.f32.gmra.mxu1 %v1761_v2 }
0x170f   :  { %1828 = vmatmul.f32.gmra.mxu1 %v1764_v47 }
0x1717   :  { %1831 = vmatmul.f32.gmra.mxu1 %v1767_v58 }
0x171c   :  { %v1787_v0 = vpop.f32.mrf.mxu1 }
0x1724   :  { %v1790_v48 = vpop.f32.mrf.mxu1 }
0x172c   :  { %v1793_v51 = vpop.f32.mrf.mxu1 }
0x1734   :  { %v1796_v59 = vpop.f32.mrf.mxu1 }
0x173c   :  { %v1799_v19 = vpop.f32.mrf.mxu1 }
0x1744   :  { %v1802_v29 = vpop.f32.mrf.mxu1 }
0x174c   :  { %v1805_v57 = vpop.f32.mrf.mxu1 }
0x1754   :  { %v1808_v31 = vpop.f32.mrf.mxu1 }
0x175c   :  { %v1811_v32 = vpop.f32.mrf.mxu1 }
0x1764   :  { %v1814_v33 = vpop.f32.mrf.mxu1 }
0x176c   :  { %v1817_v37 = vpop.f32.mrf.mxu1 }
0x1774   :  { %v1820_v53 = vpop.f32.mrf.mxu1 }
0x177c   :  { %v1823_v35 = vpop.f32.mrf.mxu1 }
0x1784   :  { %v1826_v49 = vpop.f32.mrf.mxu1 }
0x178c   :  { %v1829_v8 = vpop.f32.mrf.mxu1 }
0x1794   :  { %v1832_v12 = vpop.f32.mrf.mxu1 }
0x1795   :  { %1835 = vmatpush.msra.mxu2 %v1832_v12 }
0x1797   :  { %1836 = vmatpush.msra.mxu2 %v1829_v8 }
0x1799   :  { %1837 = vmatpush.msra.mxu2 %v1826_v49 }
0x179b   :  { %1838 = vmatpush.msra.mxu2 %v1823_v35 }
0x179d   :  { %1839 = vmatpush.msra.mxu2 %v1820_v53 }
0x179f   :  { %1840 = vmatpush.msra.mxu2 %v1817_v37 }
0x17a1   :  { %1841 = vmatpush.msra.mxu2 %v1814_v33 }
0x17a3   :  { %1842 = vmatpush.msra.mxu2 %v1811_v32 }
0x17a5   :  { %1843 = vmatpush.msra.mxu2 %v1808_v31 }
0x17a7   :  { %1844 = vmatpush.msra.mxu2 %v1805_v57 }
0x17a9   :  { %1845 = vmatpush.msra.mxu2 %v1802_v29 }
0x17ab   :  { %1846 = vmatpush.msra.mxu2 %v1799_v19 }
0x17ad   :  { %1847 = vmatpush.msra.mxu2 %v1796_v59 }
0x17af   :  { %1848 = vmatpush.msra.mxu2 %v1793_v51 }
0x17b1   :  { %1849 = vmatpush.msra.mxu2 %v1790_v48 }
0x17b3   :  { %1850 = vmatpush.msra.mxu2 %v1787_v0 }
0x17b4   :  { %1851 = vmatmul.f32.vlgmr.msra.gmra.mxu2 %v1787_v0 }
0x17bc   :  { %1854 = vmatmul.f32.gmra.mxu2 %v1790_v48 }
0x17c4   :  { %1857 = vmatmul.f32.gmra.mxu2 %v1793_v51 }
0x17cc   :  { %1860 = vmatmul.f32.gmra.mxu2 %v1796_v59 }
0x17d4   :  { %1863 = vmatmul.f32.gmra.mxu2 %v1799_v19 }
0x17dc   :  { %1866 = vmatmul.f32.gmra.mxu2 %v1802_v29 }
0x17e4   :  { %1869 = vmatmul.f32.gmra.mxu2 %v1805_v57 }
0x17ec   :  { %1872 = vmatmul.f32.gmra.mxu2 %v1808_v31 }
0x17f4   :  { %1875 = vmatmul.f32.gmra.mxu2 %v1811_v32 }
0x17fc   :  { %1878 = vmatmul.f32.gmra.mxu2 %v1814_v33 }
0x1804   :  { %1881 = vmatmul.f32.gmra.mxu2 %v1817_v37 }
0x180c   :  { %1884 = vmatmul.f32.gmra.mxu2 %v1820_v53 }
0x1814   :  { %1887 = vmatmul.f32.gmra.mxu2 %v1823_v35 }
0x181c   :  { %1890 = vmatmul.f32.gmra.mxu2 %v1826_v49 }
0x1824   :  { %1893 = vmatmul.f32.gmra.mxu2 %v1829_v8 }
0x182c   :  { %1896 = vmatmul.f32.gmra.mxu2 %v1832_v12 }
0x1837   :  { %v3019_v13 = vpop.f32.mrf.mxu2 }
0x1838   :  { %v1900_v42 = vand.u32 2147483647, %v3019_v13 }
0x183f   :  { %v3021_v4 = vpop.f32.mrf.mxu2 }
0x1840   :  { %v1901_v14 = vand.u32 2147483647, %v3021_v4 }
0x1847   :  { %v3023_v15 = vpop.f32.mrf.mxu2 }
0x1848   :  { %v1902_v28 = vand.u32 2147483647, %v3023_v15 }
0x184f   :  { %v3025_v18 = vpop.f32.mrf.mxu2 }
0x1850   :  { %v1903_v43 = vand.u32 2147483647, %v3025_v18 }
0x1857   :  { %v3027_v20 = vpop.f32.mrf.mxu2 }
0x1858   :  { %v1904_v9 = vand.u32 2147483647, %v3027_v20 }
0x185a   :  { %v1916_v63 = vmax.f32 %v1900_v42, %v1904_v9 }
0x185f   :  { %v3029_v7 = vpop.f32.mrf.mxu2 }
0x1860   :  { %v1905_v40 = vand.u32 2147483647, %v3029_v7 }
0x1862   :  { %v1917_v55 = vmax.f32 %v1901_v14, %v1905_v40 }
0x1867   :  { %v3031_v46 = vpop.f32.mrf.mxu2 }
0x1868   :  { %v1906_v16 = vand.u32 2147483647, %v3031_v46 }
0x186a   :  { %v1918_v6 = vmax.f32 %v1902_v28, %v1906_v16 }
0x186f   :  { %v3033_v3 = vpop.f32.mrf.mxu2 }
0x1870   :  { %v1907_v22 = vand.u32 2147483647, %v3033_v3 }
0x1872   :  { %v1919_v44 = vmax.f32 %v1903_v43, %v1907_v22 }
0x1877   :  { %v3035_v17 = vpop.f32.mrf.mxu2 }
0x1878   :  { %v1908_v54 = vand.u32 2147483647, %v3035_v17 }
0x187a   :  { %v1920_v36 = vmax.f32 %v1916_v63, %v1908_v54 }
0x187f   :  { %v3037_v26 = vpop.f32.mrf.mxu2 }
0x1880   :  { %v1909_v24 = vand.u32 2147483647, %v3037_v26 }
0x1882   :  { %v1921_v60 = vmax.f32 %v1917_v55, %v1909_v24  ;;  %v3113_v55 = vld [vmem:[#allocation12_spill] sm:$0xff] }
0x1887   :  { %v3039_v25 = vpop.f32.mrf.mxu2 }
0x1888   :  { %v1910_v56 = vand.u32 2147483647, %v3039_v25 }
0x188a   :  { %v1922_v30 = vmax.f32 %v1918_v6, %v1910_v56 }
0x188f   :  { %v3041_v5 = vpop.f32.mrf.mxu2 }
0x1890   :  { %v1911_v61 = vand.u32 2147483647, %v3041_v5 }
0x1892   :  { %v1923_v27 = vmax.f32 %v1919_v44, %v1911_v61 }
0x1897   :  { %v3043_v10 = vpop.f32.mrf.mxu2 }
0x1898   :  { %v1912_v52 = vand.u32 2147483647, %v3043_v10 }
0x189a   :  { %v1924_v41 = vmax.f32 %v1920_v36, %v1912_v52 }
0x189f   :  { %v3045_v45 = vpop.f32.mrf.mxu2 }
0x18a0   :  { %v1913_v62 = vand.u32 2147483647, %v3045_v45 }
0x18a2   :  { %v1925_v23 = vmax.f32 %v1921_v60, %v1913_v62 }
0x18a4   :  { %v1928_v1 = vmax.f32 %v1924_v41, %v1925_v23 }
0x18a7   :  { %v3047_v39 = vpop.f32.mrf.mxu2 }
0x18a8   :  { %v1914_v11 = vand.u32 2147483647, %v3047_v39 }
0x18aa   :  { %v1926_v50 = vmax.f32 %v1922_v30, %v1914_v11 }
0x18af   :  { %v1897_v21 = vpop.f32.mrf.mxu2 }
0x18b0   :  { %v1915_v34 = vand.u32 2147483647, %v1897_v21 }
0x18b2   :  { %v1927_v38 = vmax.f32 %v1923_v27, %v1915_v34 }
0x18b4   :  { %v1929_v2 = vmax.f32 %v1926_v50, %v1927_v38 }
0x18b6   :  { %v1930_v47 = vmax.f32 %v1928_v1, %v1929_v2 }
0x18b8   :  { %1931 = vmax.xlane.f32.xlu1 %v1930_v47 }
0x192b   :  { %v1932_v58 = vpop.xlane.xlu1 %1931 }
0x192c   :  { %v1933_v0 = vrot.slane %v1932_v58, 4 }
0x192e   :  { %v1934_v48 = vmax.f32 %v1932_v58, %v1933_v0 }
0x1930   :  { %v1935_v51 = vrot.slane %v1934_v48, 2 }
0x1932   :  { %v1936_v59 = vmax.f32 %v1934_v48, %v1935_v51 }
0x1934   :  { %v1937_v19 = vrot.slane %v1936_v59, 1 }
0x1936   :  { %v1938_v29 = vmax.f32 %v1936_v59, %v1937_v19 }
0x1938   :  { %2234 = vpush %v1938_v29 }
0x1969   :  { %s2235_s26 = spop %2234 }
0x196a   :  { %s1940_s27 = smax.f32 %s2360_s12, %s2235_s26 }
0x196b   :  { %v1941_v57 = vstv %s1940_s27 }
0x196c   :  { %2269 = vrcp.f32 %v1941_v57  ;;  %v1953_v37 = vand.u32 2147483648, %v1941_v57  ;;  %v1951_v35 = vand.u32 2147483647, %v1941_v57  ;;  %vm1947_vm11 = vweird.f32 %v1941_v57 }
0x196e   :  { %v1954_v8 = vor.u32 1.1754944e-38, %v1953_v37  ;;  %vm1952_vm13 = vcmp.eq.f32.partialorder %v1951_v35, 8.507059e+37 }
0x1972   :  { %v2270_v31 = vpop.eup %2269 }
0x1973   :  { %v1943_v32 = vmul.f32 %v2270_v31, %v1941_v57  ;;  %vm1948_vm10 = vweird.f32 %v2270_v31 }
0x1974   :  { %vm1949_vm12 = vmor %vm1947_vm11, %vm1948_vm10 }
0x1975   :  { %v1944_v33 = vsub.f32 1.0, %v1943_v32 }
0x1977   :  { %v1945_v53 = vmul.f32 %v2270_v31, %v1944_v33 }
0x1979   :  { %v1946_v49 = vadd.f32 %v2270_v31, %v1945_v53 }
0x197b   :  { %v1950_v12 = vsel %vm1949_vm12, %v2270_v31, %v1946_v49 }
0x197c   :  { %v1955_v40 = vsel %vm1952_vm13, %v1954_v8, %v1950_v12 }
0x197d   :  { %2236 = vpush %v1955_v40 }
0x19ae   :  { %s2237_s2 = spop %2236 }
0x19af   :  { %v1957_v42 = vstv %s2237_s2 }
0x19b0   :  { %v1973_v9 = vmul.f32 %v1957_v42, %v1897_v21  ;;  %v1972_v16 = vmul.f32 %v1957_v42, %v3047_v39  ;;  %v1971_v14 = vmul.f32 %v1957_v42, %v3045_v45  ;;  %v1970_v22 = vmul.f32 %v1957_v42, %v3043_v10 }
0x19b1   :  { %v1969_v24 = vmul.f32 %v1957_v42, %v3041_v5  ;;  %v1968_v28 = vmul.f32 %v1957_v42, %v3039_v25  ;;  %v1967_v43 = vmul.f32 %v1957_v42, %v3037_v26  ;;  %v1966_v54 = vmul.f32 %v1957_v42, %v3035_v17 }
0x19b2   :  { %1977 = vmatpush.msrb.mxu1 %v1973_v9  ;;  %v1965_v39 = vmul.f32 %v1957_v42, %v3033_v3  ;;  %v1964_v45 = vmul.f32 %v1957_v42, %v3031_v46  ;;  %v1963_v10 = vmul.f32 %v1957_v42, %v3029_v7  ;;  %v1974_v5 = vcvt.s32.f32 %v3113_v55 }
0x19b3   :  { %v1962_v25 = vmul.f32 %v1957_v42, %v3027_v20  ;;  %v1961_v26 = vmul.f32 %v1957_v42, %v3025_v18  ;;  %v1960_v17 = vmul.f32 %v1957_v42, %v3023_v15  ;;  %v1959_v3 = vmul.f32 %v1957_v42, %v3021_v4 }
0x19b4   :  { %1978 = vmatpush.msrb.mxu1 %v1972_v16  ;;  %v1975_v56 = vmul.f32 0.001, %v1974_v5  ;;  %v1958_v46 = vmul.f32 %v1957_v42, %v3019_v13 }
0x19b6   :  { %1979 = vmatpush.msrb.mxu1 %v1971_v14  ;;  %v1976_v61 = vadd.f32 1.0, %v1975_v56  ;;  %v2115_v56 = vstv %s3099_s3 }
0x19b8   :  { %1980 = vmatpush.msrb.mxu1 %v1970_v22 }
0x19ba   :  { %1981 = vmatpush.msrb.mxu1 %v1969_v24 }
0x19bc   :  { %1982 = vmatpush.msrb.mxu1 %v1968_v28 }
0x19be   :  { %1983 = vmatpush.msrb.mxu1 %v1967_v43 }
0x19c0   :  { %1984 = vmatpush.msrb.mxu1 %v1966_v54 }
0x19c2   :  { %1985 = vmatpush.msrb.mxu1 %v1965_v39 }
0x19c4   :  { %1986 = vmatpush.msrb.mxu1 %v1964_v45 }
0x19c6   :  { %1987 = vmatpush.msrb.mxu1 %v1963_v10 }
0x19c8   :  { %1988 = vmatpush.msrb.mxu1 %v1962_v25 }
0x19ca   :  { %1989 = vmatpush.msrb.mxu1 %v1961_v26 }
0x19cc   :  { %1990 = vmatpush.msrb.mxu1 %v1960_v17 }
0x19ce   :  { %1991 = vmatpush.msrb.mxu1 %v1959_v3 }
0x19d0   :  { %1992 = vmatpush.msrb.mxu1 %v1958_v46 }
0x19d1   :  { %1993 = vmatmul.f32.vlgmr.msrb.gmra.mxu1 %v1976_v61  ;;  %v2277_v61 = vld [vmem:[%s3097_s1] sm:$0x1] }
0x1a4e   :  { %v1994_v7 = vpop.f32.mrf.mxu1 }
0x1a4f   :  { %v1997_v62 = vmul.f32 %v1994_v7, %v1994_v7 }
0x1a51   :  { %v1998_v20 = vsel %vm122_vm0, %v1997_v62, 0.0 }
0x1a52   :  { %1999 = vadd.xlane.f32.xlu2 %v1998_v20 }
0x1ac5   :  { %v2000_v63 = vpop.xlane.xlu2 %1999 }
0x1ac6   :  { %v2001_v18 = vrot.slane %v2000_v63, 4 }
0x1ac8   :  { %v2002_v6 = vadd.f32 %v2001_v18, %v2000_v63 }
0x1aca   :  { %v2003_v44 = vrot.slane %v2002_v6, 2 }
0x1acc   :  { %v2004_v60 = vadd.f32 %v2003_v44, %v2002_v6 }
0x1ace   :  { %v2005_v15 = vrot.slane %v2004_v60, 1 }
0x1ad0   :  { %v2006_v52 = vadd.f32 %v2005_v15, %v2004_v60 }
0x1ad2   :  { %2238 = vpush %v2006_v52 }
0x1b03   :  { %s2239_s28 = spop %2238 }
0x1b04   :  { %s2008_s29 = sadd.f32 1e-30, %s2239_s28 }
0x1b06   :  { %v2009_v4 = vstv %s2008_s29 }
0x1b07   :  { %2271 = vrsqrt.f32 %v2009_v4  ;;  %vm2016_vm15 = vweird.f32 %v2009_v4 }
0x1b0d   :  { %v2272_v13 = vpop.eup %2271 }
0x1b0e   :  { %v2011_v11 = vmul.f32 %v2272_v13, %v2009_v4  ;;  %vm2017_vm14 = vweird.f32 %v2272_v13 }
0x1b0f   :  { %vm2018_vm1 = vmor %vm2016_vm15, %vm2017_vm14 }
0x1b10   :  { %v2012_v36 = vmul.f32 %v2272_v13, %v2011_v11 }
0x1b12   :  { %v2013_v21 = vmul.f32 0.5, %v2012_v36 }
0x1b14   :  { %v2014_v30 = vsub.f32 1.5, %v2013_v21 }
0x1b16   :  { %v2015_v27 = vmul.f32 %v2272_v13, %v2014_v30 }
0x1b18   :  { %v2019_v23 = vsel %vm2018_vm1, %v2272_v13, %v2015_v27 }
0x1b19   :  { %2240 = vpush %v2019_v23 }
0x1b4a   :  { %s2241_s30 = spop %2240 }
0x1b4b   :  { %v2021_v34 = vstv %s2241_s30 }
0x1b4c   :  { %v2022_v41 = vmul.f32 %v2021_v34, %v1994_v7 }
0x1b4e   :  { %2039 = vmatmul.f32.vlgmr.msra.gmra.mxu3 %v2022_v41 }
0x1bd1   :  { %v2040_v50 = vpop.f32.mrf.mxu3 }
0x1bd2   :  { %v2043_v38 = vmul.f32 %v2040_v50, %v2040_v50 }
0x1bd4   :  { %v2044_v1 = vsel %vm122_vm0, %v2043_v38, 0.0 }
0x1bd5   :  { %2045 = vadd.xlane.f32.xlu1 %v2044_v1 }
0x1c48   :  { %v2046_v2 = vpop.xlane.xlu1 %2045 }
0x1c49   :  { %v2047_v47 = vrot.slane %v2046_v2, 4 }
0x1c4b   :  { %v2048_v58 = vadd.f32 %v2047_v47, %v2046_v2 }
0x1c4d   :  { %v2049_v0 = vrot.slane %v2048_v58, 2 }
0x1c4f   :  { %v2050_v48 = vadd.f32 %v2049_v0, %v2048_v58 }
0x1c51   :  { %v2051_v51 = vrot.slane %v2050_v48, 1 }
0x1c53   :  { %v2052_v59 = vadd.f32 %v2051_v51, %v2050_v48 }
0x1c55   :  { %2242 = vpush %v2052_v59 }
0x1c86   :  { %s2243_s6 = spop %2242 }
0x1c87   :  { %s2054_s7 = sadd.f32 1e-30, %s2243_s6 }
0x1c89   :  { %v2055_v19 = vstv %s2054_s7 }
0x1c8a   :  { %2273 = vrsqrt.f32 %v2055_v19  ;;  %vm2062_vm3 = vweird.f32 %v2055_v19 }
0x1c90   :  { %v2274_v29 = vpop.eup %2273 }
0x1c91   :  { %v2057_v57 = vmul.f32 %v2274_v29, %v2055_v19  ;;  %vm2063_vm2 = vweird.f32 %v2274_v29 }
0x1c92   :  { %vm2064_vm4 = vmor %vm2062_vm3, %vm2063_vm2 }
0x1c93   :  { %v2058_v31 = vmul.f32 %v2274_v29, %v2057_v57 }
0x1c95   :  { %v2059_v32 = vmul.f32 0.5, %v2058_v31 }
0x1c97   :  { %v2060_v33 = vsub.f32 1.5, %v2059_v32 }
0x1c99   :  { %v2061_v37 = vmul.f32 %v2274_v29, %v2060_v33 }
0x1c9b   :  { %v2065_v53 = vsel %vm2064_vm4, %v2274_v29, %v2061_v37 }
0x1c9c   :  { %2244 = vpush %v2065_v53 }
0x1ccd   :  { %s2245_s8 = spop %2244 }
0x1cce   :  { %v2067_v35 = vstv %s2245_s8 }
0x1ccf   :  { %v2068_v49 = vmul.f32 %v2067_v35, %v2040_v50 }
0x1cd1   :  { %2085 = vmatmul.f32.vlgmr.msrb.gmra.mxu0 %v2068_v49 }
0x1d4e   :  { %v2086_v8 = vpop.f32.mrf.mxu0 }
0x1d4f   :  { %v2089_v12 = vmul.f32 %v2086_v8, %v2086_v8 }
0x1d51   :  { %v2090_v40 = vsel %vm122_vm0, %v2089_v12, 0.0 }
0x1d52   :  { %2091 = vadd.xlane.f32.xlu2 %v2090_v40 }
0x1dc5   :  { %v2092_v42 = vpop.xlane.xlu2 %2091 }
0x1dc6   :  { %v2093_v9 = vrot.slane %v2092_v42, 4 }
0x1dc8   :  { %v2094_v16 = vadd.f32 %v2093_v9, %v2092_v42 }
0x1dca   :  { %v2095_v14 = vrot.slane %v2094_v16, 2 }
0x1dcc   :  { %v2096_v22 = vadd.f32 %v2095_v14, %v2094_v16 }
0x1dce   :  { %v2097_v24 = vrot.slane %v2096_v22, 1 }
0x1dd0   :  { %v2098_v28 = vadd.f32 %v2097_v24, %v2096_v22 }
0x1dd2   :  { %2246 = vpush %v2098_v28 }
0x1e03   :  { %s2247_s14 = spop %2246 }
0x1e04   :  { %s2100_s15 = sadd.f32 1e-30, %s2247_s14 }
0x1e06   :  { %v2101_v43 = vstv %s2100_s15 }
0x1e07   :  { %2275 = vrsqrt.f32 %v2101_v43  ;;  %vm2108_vm5 = vweird.f32 %v2101_v43 }
0x1e0d   :  { %v2276_v54 = vpop.eup %2275 }
0x1e0e   :  { %v2103_v39 = vmul.f32 %v2276_v54, %v2101_v43  ;;  %vm2109_vm0 = vweird.f32 %v2276_v54 }
0x1e0f   :  { %vm2110_vm6 = vmor %vm2108_vm5, %vm2109_vm0 }
0x1e10   :  { %v2104_v45 = vmul.f32 %v2276_v54, %v2103_v39 }
0x1e12   :  { %v2105_v10 = vmul.f32 0.5, %v2104_v45 }
0x1e14   :  { %v2106_v55 = vsub.f32 1.5, %v2105_v10 }
0x1e16   :  { %v2107_v5 = vmul.f32 %v2276_v54, %v2106_v55 }
0x1e18   :  { %v2111_v25 = vsel %vm2110_vm6, %v2276_v54, %v2107_v5 }
0x1e19   :  { %2248 = vpush %v2111_v25 }
0x1e4a   :  { %s2249_s16 = spop %2248 }
0x1e4b   :  { %v2113_v26 = vstv %s2249_s16 }
0x1e4c   :  { %v2114_v17 = vmul.f32 %v2113_v26, %v2086_v8 }
0x1e4e   :  { %v2116_v3 = vmul.f32 %v2115_v56, %v2114_v17 }
0x1e50   :  { %v2117_v46 = vadd.f32 %v2277_v61, %v2116_v3 }
0x1e52   :  { %2118 = vst [vmem:[#allocation6] sm:$0x1] %v2117_v46 }
0x1e53   :  { %2129 = dma.vmem_to_hbm [thread:$0]  %s2125_s19, 16, %s2127_s22, [#allocation5]  }
0x1e54   :  { %2352 = dma.done.wait [#allocation5], 16  }
0x1e55   :  { %2353 = vsyncadd [#allocation5], 4294967280 }
0x1e56   :  { %2354 = dma.done.wait [#allocation8], 16  }
0x1e57   :  { %2355 = vsyncadd [#allocation8], 4294967280 }
0x1e58   :  { %2149 = vsyncpa [#allocation4], 1 }
0x1e59   :  { %2150 = vsyncpa [#allocation5], 1 }
0x1e5a   :  { %2151 = vsyncpa [#allocation8], 1 }

</bundles_post_ra>
